<compile_context>
chip_gen: v5e
topology: v5e:2x2
jax: 0.10.0
libtpu: 0.0.40
codegen_flags: <defaults>
</compile_context>

<pallas_src>
import functools

import jax
import jax.numpy as jnp
from jax.experimental import pallas as pl
from jax.experimental.pallas import tpu as pltpu

# ----------------------------- model config ---------------------------------
VOCAB = 50          # synthetic vocab
TYPE_VOCAB = 2
MAX_POS = 16
HIDDEN = 32         # stands in for hidden_size=768
N_HEADS = 2
HEAD_DIM = HIDDEN // N_HEADS
FFN = 64
N_LAYERS = 2
N_CLASSES = 4       # stands in for len(tar2id)
LN_EPS = 1e-12
OUT_PAD = 128       # lane-dense padded classifier width (>= N_CLASSES)

_SQRT_HALF = 0.7071067811865476


# ------------------------------ in-kernel helpers ----------------------------
def _mm(a, b):
    """a @ b with bf16 MXU inputs and f32 accumulation."""
    return jnp.dot(a.astype(jnp.bfloat16), b.astype(jnp.bfloat16),
                   preferred_element_type=jnp.float32)


def _mm_nt(a, b):
    """a @ b.T (contract last dims of both) with bf16 inputs, f32 accum."""
    return jax.lax.dot_general(
        a.astype(jnp.bfloat16), b.astype(jnp.bfloat16),
        dimension_numbers=(((1,), (1,)), ((), ())),
        preferred_element_type=jnp.float32)


def _layernorm(z, g, b):
    """LayerNorm over last dim; z:(M,H), g,b:(1,H), all f32."""
    mean = jnp.mean(z, axis=-1, keepdims=True)
    var = jnp.mean(jnp.square(z - mean), axis=-1, keepdims=True)
    return (z - mean) * jax.lax.rsqrt(var + jnp.float32(LN_EPS)) * g + b


# ------------------------------ fused kernel --------------------------------
def _model_kernel(x_ref, mask_ref, embln_ref,
                  wqkv_ref, bqkv_ref, wo_ref, bo_ref, ln1_ref,
                  w1_ref, b1_ref, w2_ref, b2_ref, ln2_ref,
                  fcw_ref, fcb_ref, o_ref, *, batch, seq):
    f32 = jnp.float32
    x = x_ref[...].astype(f32)                                   # (B*S, H)

    # Embedding LayerNorm (no residual / zeros tensor).
    x = _layernorm(x, embln_ref[0, :, :], embln_ref[1, :, :])

    for layer in range(N_LAYERS):
        # ---------------- self-attention ----------------
        # wq/bq are pre-scaled by 1/sqrt(HEAD_DIM) at pack time.
        attn_out = jnp.zeros((batch * seq, HIDDEN), f32)
        for h in range(N_HEADS):
            q = _mm(x, wqkv_ref[layer, 0, h, :, :]) + bqkv_ref[layer, 0, h, :, :]
            k = _mm(x, wqkv_ref[layer, 1, h, :, :]) + bqkv_ref[layer, 1, h, :, :]
            v = _mm(x, wqkv_ref[layer, 2, h, :, :]) + bqkv_ref[layer, 2, h, :, :]
            ctx_rows = []
            for b in range(batch):
                lo, hi = b * seq, (b + 1) * seq                  # sublane-aligned (S=8)
                qb, kb, vb = q[lo:hi, :], k[lo:hi, :], v[lo:hi, :]
                s = _mm_nt(qb, kb) + mask_ref[b, :, :]           # (S,S) + (1,S) additive mask
                s = s - jnp.max(s, axis=-1, keepdims=True)
                p = jnp.exp(s)
                p = p * pl.reciprocal(jnp.sum(p, axis=-1, keepdims=True),
                                      approx=True)
                ctx_rows.append(_mm(p, vb))                      # (S, Dh)
            ctx_h = jnp.concatenate(ctx_rows, axis=0)            # (B*S, Dh)
            attn_out = attn_out + _mm(ctx_h, wo_ref[layer, h, :, :])
        attn_out = attn_out + bo_ref[layer, :, :]

        # post-LN (residual + LayerNorm), matching HF BERT
        x = _layernorm(x + attn_out,
                       ln1_ref[layer, 0, :, :], ln1_ref[layer, 1, :, :])

        # ---------------- feed-forward (exact erf GELU) ----------------
        hmid = _mm(x, w1_ref[layer, :, :]) + b1_ref[layer, :, :]
        hmid = 0.5 * hmid * (1.0 + jax.lax.erf(hmid * jnp.float32(_SQRT_HALF)))
        ffn = _mm(hmid, w2_ref[layer, :, :]) + b2_ref[layer, :, :]
        x = _layernorm(x + ffn,
                       ln2_ref[layer, 0, :, :], ln2_ref[layer, 1, :, :])

    # ---------------- classifier (lane-dense padded store) ----------------
    # Compute logits for all rows; CLS rows are selected outside.
    logits = _mm(x, fcw_ref[...]) + fcb_ref[...]                 # (B*S, 128)
    o_ref[...] = logits.astype(o_ref.dtype)


def _full_spec(shape):
    zeros = (0,) * len(shape)
    return pl.BlockSpec(shape, lambda i, _z=zeros: _z)


# ------------------------------ parameter init ------------------------------
def _init(key, shape, scale=0.02):
    return scale * jax.random.normal(key, shape, dtype=jnp.float32)


def pack_params(p):
    """Pre-pack weights for the fused kernel: per-head split, 1/sqrt(Dh)
    folded into wq/bq, bf16 matmul weights, lane-padded classifier."""
    inv = jnp.float32(1.0 / (HEAD_DIM ** 0.5))

    def w_heads(w):                       # (H, H) -> (nH, H, Dh)
        return w.reshape(HIDDEN, N_HEADS, HEAD_DIM).transpose(1, 0, 2)

    def b_heads(b):                       # (H,) -> (nH, 1, Dh)
        return b.reshape(N_HEADS, 1, HEAD_DIM)

    L = p["layers"]
    wqkv = jnp.stack([jnp.stack([w_heads(lp["wq"] * inv),
                                 w_heads(lp["wk"]),
                                 w_heads(lp["wv"])]) for lp in L])   # (L,3,nH,H,Dh)
    bqkv = jnp.stack([jnp.stack([b_heads(lp["bq"] * inv),
                                 b_heads(lp["bk"]),
                                 b_heads(lp["bv"])]) for lp in L])   # (L,3,nH,1,Dh)
    wo = jnp.stack([lp["wo"].reshape(N_HEADS, HEAD_DIM, HIDDEN) for lp in L])
    bo = jnp.stack([lp["bo"].reshape(1, HIDDEN) for lp in L])
    ln1 = jnp.stack([jnp.stack([lp["ln1_g"].reshape(1, HIDDEN),
                                lp["ln1_b"].reshape(1, HIDDEN)]) for lp in L])
    w1 = jnp.stack([lp["w1"] for lp in L])
    b1 = jnp.stack([lp["b1"].reshape(1, FFN) for lp in L])
    w2 = jnp.stack([lp["w2"] for lp in L])
    b2 = jnp.stack([lp["b2"].reshape(1, HIDDEN) for lp in L])
    ln2 = jnp.stack([jnp.stack([lp["ln2_g"].reshape(1, HIDDEN),
                                lp["ln2_b"].reshape(1, HIDDEN)]) for lp in L])
    embln = jnp.stack([p["emb_ln_g"].reshape(1, HIDDEN),
                       p["emb_ln_b"].reshape(1, HIDDEN)])            # (2,1,H)
    fcw = jnp.zeros((HIDDEN, OUT_PAD), jnp.float32).at[:, :N_CLASSES].set(p["fc_w"])
    fcb = jnp.zeros((1, OUT_PAD), jnp.float32).at[0, :N_CLASSES].set(p["fc_b"])

    bf16 = jnp.bfloat16
    return {
        "embln": embln,
        "wqkv": wqkv.astype(bf16), "bqkv": bqkv,
        "wo": wo.astype(bf16), "bo": bo,
        "ln1": ln1,
        "w1": w1.astype(bf16), "b1": b1,
        "w2": w2.astype(bf16), "b2": b2,
        "ln2": ln2,
        "fcw": fcw.astype(bf16), "fcb": fcb,
    }


def init_params(key):
    keys = iter(jax.random.split(key, 128))
    p = {
        "word_emb": _init(next(keys), (VOCAB, HIDDEN)),
        "pos_emb": _init(next(keys), (MAX_POS, HIDDEN)),
        "type_emb": _init(next(keys), (TYPE_VOCAB, HIDDEN)),
        "emb_ln_g": jnp.ones((HIDDEN,), jnp.float32),
        "emb_ln_b": jnp.zeros((HIDDEN,), jnp.float32),
        "layers": [],
        "fc_w": _init(next(keys), (HIDDEN, N_CLASSES)),
        "fc_b": jnp.zeros((N_CLASSES,), jnp.float32),
    }
    for _ in range(N_LAYERS):
        lp = {
            "wq": _init(next(keys), (HIDDEN, HIDDEN)), "bq": jnp.zeros((HIDDEN,), jnp.float32),
            "wk": _init(next(keys), (HIDDEN, HIDDEN)), "bk": jnp.zeros((HIDDEN,), jnp.float32),
            "wv": _init(next(keys), (HIDDEN, HIDDEN)), "bv": jnp.zeros((HIDDEN,), jnp.float32),
            "wo": _init(next(keys), (HIDDEN, HIDDEN)), "bo": jnp.zeros((HIDDEN,), jnp.float32),
            "ln1_g": jnp.ones((HIDDEN,), jnp.float32), "ln1_b": jnp.zeros((HIDDEN,), jnp.float32),
            "w1": _init(next(keys), (HIDDEN, FFN)), "b1": jnp.zeros((FFN,), jnp.float32),
            "w2": _init(next(keys), (FFN, HIDDEN)), "b2": jnp.zeros((HIDDEN,), jnp.float32),
            "ln2_g": jnp.ones((HIDDEN,), jnp.float32), "ln2_b": jnp.zeros((HIDDEN,), jnp.float32),
        }
        p["layers"].append(lp)
    p["packed"] = pack_params(p)
    return p


# ------------------------------ forward pass ---------------------------------
def my_model_forward(params, input_ids, attn_masks, token_type):
    B, S = input_ids.shape

    # Embedding lookups (plain-JAX glue).
    emb = (params["word_emb"][input_ids]
           + params["pos_emb"][jnp.arange(S)][None, :, :]
           + params["type_emb"][token_type])
    x2d = emb.reshape(B * S, HIDDEN).astype(jnp.float32)

    # BERT-style additive mask: 0 where attend, -1e9 on padding keys. (B,1,S)
    add_mask = (1.0 - attn_masks.astype(jnp.float32))[:, None, :] * -1e9

    pk = params["packed"]
    inputs = (x2d, add_mask, pk["embln"],
              pk["wqkv"], pk["bqkv"], pk["wo"], pk["bo"], pk["ln1"],
              pk["w1"], pk["b1"], pk["w2"], pk["b2"], pk["ln2"],
              pk["fcw"], pk["fcb"])

    out = pl.pallas_call(
        functools.partial(_model_kernel, batch=B, seq=S),
        out_shape=jax.ShapeDtypeStruct((B * S, OUT_PAD), jnp.float32),
        grid=(1,),
        in_specs=[_full_spec(t.shape) for t in inputs],
        out_specs=_full_spec((B * S, OUT_PAD)),
        compiler_params=pltpu.CompilerParams(
            dimension_semantics=("arbitrary",)),
    )(*inputs)

    # last_hidden_state[:, 0, :] -> CLS rows; drop lane padding of the logits.
    return out.reshape(B, S, OUT_PAD)[:, 0, :N_CLASSES]


# ---------------------------------- main -------------------------------------
if __name__ == "__main__":
    # TODO(synk): BertModel.from_pretrained('./RoBerta/') checkpoint loading has
    # no in-script equivalent; weights are deterministic synthetic inits.
    B, S = 2, 8
    key = jax.random.PRNGKey(0)
    k_ids, k_params = jax.random.split(key)

    input_ids = jax.random.randint(k_ids, (B, S), 0, VOCAB, dtype=jnp.int32)
    token_type = jnp.zeros((B, S), dtype=jnp.int32)
    attn_masks = jnp.ones((B, S), dtype=jnp.int32).at[1, 6:].set(0)  # pad tail of ex. 1

    params = init_params(k_params)

    out = my_model_forward(params, input_ids, attn_masks, token_type)
    out = jax.block_until_ready(out)
    assert out.shape == (B, N_CLASSES), out.shape
    print("KERNEL_OK")
</pallas_src>

<mosaic_0001>
module attributes {stable_mosaic.version = 11 : i64} {
  func.func @_model_kernel(%arg0: i32, %arg1: memref<16x32xf32, #tpu.memory_space<vmem>>, %arg2: memref<2x1x8xf32, #tpu.memory_space<vmem>>, %arg3: memref<2x1x32xf32, #tpu.memory_space<vmem>>, %arg4: memref<2x3x2x32x16xbf16, #tpu.memory_space<vmem>>, %arg5: memref<2x3x2x1x16xf32, #tpu.memory_space<vmem>>, %arg6: memref<2x2x16x32xbf16, #tpu.memory_space<vmem>>, %arg7: memref<2x1x32xf32, #tpu.memory_space<vmem>>, %arg8: memref<2x2x1x32xf32, #tpu.memory_space<vmem>>, %arg9: memref<2x32x64xbf16, #tpu.memory_space<vmem>>, %arg10: memref<2x1x64xf32, #tpu.memory_space<vmem>>, %arg11: memref<2x64x32xbf16, #tpu.memory_space<vmem>>, %arg12: memref<2x1x32xf32, #tpu.memory_space<vmem>>, %arg13: memref<2x2x1x32xf32, #tpu.memory_space<vmem>>, %arg14: memref<32x128xbf16, #tpu.memory_space<vmem>>, %arg15: memref<1x128xf32, #tpu.memory_space<vmem>>, %arg16: memref<16x128xf32, #tpu.memory_space<vmem>>) attributes {dimension_semantics = [#tpu.dimension_semantics<arbitrary>], iteration_bounds = array<i64: 1>, scalar_prefetch = 0 : i64, scratch_operands = 0 : i64, tpu.core_type = #tpu.core_type<tc>, window_params = [{pipeline_mode = #tpu.pipeline_mode<synchronous>, transform_indices = @transform_0, window_bounds = array<i64: 16, 32>}, {pipeline_mode = #tpu.pipeline_mode<synchronous>, transform_indices = @transform_1, window_bounds = array<i64: 2, 1, 8>}, {pipeline_mode = #tpu.pipeline_mode<synchronous>, transform_indices = @transform_2, window_bounds = array<i64: 2, 1, 32>}, {pipeline_mode = #tpu.pipeline_mode<synchronous>, transform_indices = @transform_3, window_bounds = array<i64: 2, 3, 2, 32, 16>}, {pipeline_mode = #tpu.pipeline_mode<synchronous>, transform_indices = @transform_4, window_bounds = array<i64: 2, 3, 2, 1, 16>}, {pipeline_mode = #tpu.pipeline_mode<synchronous>, transform_indices = @transform_5, window_bounds = array<i64: 2, 2, 16, 32>}, {pipeline_mode = #tpu.pipeline_mode<synchronous>, transform_indices = @transform_6, window_bounds = array<i64: 2, 1, 32>}, {pipeline_mode = #tpu.pipeline_mode<synchronous>, transform_indices = @transform_7, window_bounds = array<i64: 2, 2, 1, 32>}, {pipeline_mode = #tpu.pipeline_mode<synchronous>, transform_indices = @transform_8, window_bounds = array<i64: 2, 32, 64>}, {pipeline_mode = #tpu.pipeline_mode<synchronous>, transform_indices = @transform_9, window_bounds = array<i64: 2, 1, 64>}, {pipeline_mode = #tpu.pipeline_mode<synchronous>, transform_indices = @transform_10, window_bounds = array<i64: 2, 64, 32>}, {pipeline_mode = #tpu.pipeline_mode<synchronous>, transform_indices = @transform_11, window_bounds = array<i64: 2, 1, 32>}, {pipeline_mode = #tpu.pipeline_mode<synchronous>, transform_indices = @transform_12, window_bounds = array<i64: 2, 2, 1, 32>}, {pipeline_mode = #tpu.pipeline_mode<synchronous>, transform_indices = @transform_13, window_bounds = array<i64: 32, 128>}, {pipeline_mode = #tpu.pipeline_mode<synchronous>, transform_indices = @transform_14, window_bounds = array<i64: 1, 128>}, {pipeline_mode = #tpu.pipeline_mode<synchronous>, transform_indices = @transform_15, window_bounds = array<i64: 16, 128>}]} {
    %c0 = arith.constant 0 : index
    %c0_0 = arith.constant 0 : index
    %0 = vector.load %arg1[%c0, %c0_0] : memref<16x32xf32, #tpu.memory_space<vmem>>, vector<16x32xf32>
    %c0_1 = arith.constant 0 : index
    %c0_2 = arith.constant 0 : index
    %c0_3 = arith.constant 0 : index
    %1 = vector.load %arg3[%c0_1, %c0_2, %c0_3] : memref<2x1x32xf32, #tpu.memory_space<vmem>>, vector<1x1x32xf32>
    %2 = vector.shape_cast %1 : vector<1x1x32xf32> to vector<1x32xf32>
    %c1 = arith.constant 1 : index
    %c0_4 = arith.constant 0 : index
    %c0_5 = arith.constant 0 : index
    %3 = vector.load %arg3[%c1, %c0_4, %c0_5] : memref<2x1x32xf32, #tpu.memory_space<vmem>>, vector<1x1x32xf32>
    %4 = vector.shape_cast %3 : vector<1x1x32xf32> to vector<1x32xf32>
    %cst = arith.constant dense<0.000000e+00> : vector<16xf32>
    %5 = vector.multi_reduction <add>, %0, %cst [1] : vector<16x32xf32> to vector<16xf32>
    %6 = vector.shape_cast %5 : vector<16xf32> to vector<16x1xf32>
    %cst_6 = arith.constant 3.200000e+01 : f32
    %7 = vector.broadcast %cst_6 : f32 to vector<16x1xf32>
    %8 = arith.divf %6, %7 : vector<16x1xf32>
    %9 = vector.broadcast %8 : vector<16x1xf32> to vector<16x32xf32>
    %10 = arith.subf %0, %9 : vector<16x32xf32>
    %11 = arith.mulf %10, %10 : vector<16x32xf32>
    %cst_7 = arith.constant dense<0.000000e+00> : vector<16xf32>
    %12 = vector.multi_reduction <add>, %11, %cst_7 [1] : vector<16x32xf32> to vector<16xf32>
    %13 = vector.shape_cast %12 : vector<16xf32> to vector<16x1xf32>
    %cst_8 = arith.constant 3.200000e+01 : f32
    %14 = vector.broadcast %cst_8 : f32 to vector<16x1xf32>
    %15 = arith.divf %13, %14 : vector<16x1xf32>
    %16 = vector.broadcast %8 : vector<16x1xf32> to vector<16x32xf32>
    %17 = arith.subf %0, %16 : vector<16x32xf32>
    %cst_9 = arith.constant 9.99999996E-13 : f32
    %18 = vector.broadcast %cst_9 : f32 to vector<16x1xf32>
    %19 = arith.addf %15, %18 : vector<16x1xf32>
    %20 = math.rsqrt %19 : vector<16x1xf32>
    %21 = vector.broadcast %20 : vector<16x1xf32> to vector<16x32xf32>
    %22 = arith.mulf %17, %21 : vector<16x32xf32>
    %23 = vector.broadcast %2 : vector<1x32xf32> to vector<16x32xf32>
    %24 = arith.mulf %22, %23 : vector<16x32xf32>
    %25 = vector.broadcast %4 : vector<1x32xf32> to vector<16x32xf32>
    %26 = arith.addf %24, %25 : vector<16x32xf32>
    %cst_10 = arith.constant 0.000000e+00 : f32
    %27 = vector.broadcast %cst_10 : f32 to vector<16x32xf32>
    %c0_11 = arith.constant 0 : index
    %c0_12 = arith.constant 0 : index
    %c0_13 = arith.constant 0 : index
    %c0_14 = arith.constant 0 : index
    %c0_15 = arith.constant 0 : index
    %28 = vector.load %arg4[%c0_11, %c0_12, %c0_13, %c0_14, %c0_15] : memref<2x3x2x32x16xbf16, #tpu.memory_space<vmem>>, vector<1x1x1x32x16xbf16>
    %29 = vector.shape_cast %28 : vector<1x1x1x32x16xbf16> to vector<32x16xbf16>
    %30 = arith.truncf %26 : vector<16x32xf32> to vector<16x32xbf16>
    %cst_16 = arith.constant dense<0.000000e+00> : vector<16x16xf32>
    %31 = tpu.matmul %30, %29, %cst_16 {dimension_numbers = #tpu.dot_dimension_numbers<[1], [0], [0], [1], [0, 0, 1, 1], [], []>} : vector<16x32xbf16>, vector<32x16xbf16>, vector<16x16xf32> -> vector<16x16xf32>
    %c0_17 = arith.constant 0 : index
    %c0_18 = arith.constant 0 : index
    %c0_19 = arith.constant 0 : index
    %c0_20 = arith.constant 0 : index
    %c0_21 = arith.constant 0 : index
    %32 = vector.load %arg5[%c0_17, %c0_18, %c0_19, %c0_20, %c0_21] : memref<2x3x2x1x16xf32, #tpu.memory_space<vmem>>, vector<1x1x1x1x16xf32>
    %33 = vector.shape_cast %32 : vector<1x1x1x1x16xf32> to vector<1x16xf32>
    %34 = vector.broadcast %33 : vector<1x16xf32> to vector<16x16xf32>
    %35 = arith.addf %31, %34 : vector<16x16xf32>
    %c0_22 = arith.constant 0 : index
    %c1_23 = arith.constant 1 : index
    %c0_24 = arith.constant 0 : index
    %c0_25 = arith.constant 0 : index
    %c0_26 = arith.constant 0 : index
    %36 = vector.load %arg4[%c0_22, %c1_23, %c0_24, %c0_25, %c0_26] : memref<2x3x2x32x16xbf16, #tpu.memory_space<vmem>>, vector<1x1x1x32x16xbf16>
    %37 = vector.shape_cast %36 : vector<1x1x1x32x16xbf16> to vector<32x16xbf16>
    %38 = arith.truncf %26 : vector<16x32xf32> to vector<16x32xbf16>
    %cst_27 = arith.constant dense<0.000000e+00> : vector<16x16xf32>
    %39 = tpu.matmul %38, %37, %cst_27 {dimension_numbers = #tpu.dot_dimension_numbers<[1], [0], [0], [1], [0, 0, 1, 1], [], []>} : vector<16x32xbf16>, vector<32x16xbf16>, vector<16x16xf32> -> vector<16x16xf32>
    %c0_28 = arith.constant 0 : index
    %c1_29 = arith.constant 1 : index
    %c0_30 = arith.constant 0 : index
    %c0_31 = arith.constant 0 : index
    %c0_32 = arith.constant 0 : index
    %40 = vector.load %arg5[%c0_28, %c1_29, %c0_30, %c0_31, %c0_32] : memref<2x3x2x1x16xf32, #tpu.memory_space<vmem>>, vector<1x1x1x1x16xf32>
    %41 = vector.shape_cast %40 : vector<1x1x1x1x16xf32> to vector<1x16xf32>
    %42 = vector.broadcast %41 : vector<1x16xf32> to vector<16x16xf32>
    %43 = arith.addf %39, %42 : vector<16x16xf32>
    %c0_33 = arith.constant 0 : index
    %c2 = arith.constant 2 : index
    %c0_34 = arith.constant 0 : index
    %c0_35 = arith.constant 0 : index
    %c0_36 = arith.constant 0 : index
    %44 = vector.load %arg4[%c0_33, %c2, %c0_34, %c0_35, %c0_36] : memref<2x3x2x32x16xbf16, #tpu.memory_space<vmem>>, vector<1x1x1x32x16xbf16>
    %45 = vector.shape_cast %44 : vector<1x1x1x32x16xbf16> to vector<32x16xbf16>
    %46 = arith.truncf %26 : vector<16x32xf32> to vector<16x32xbf16>
    %cst_37 = arith.constant dense<0.000000e+00> : vector<16x16xf32>
    %47 = tpu.matmul %46, %45, %cst_37 {dimension_numbers = #tpu.dot_dimension_numbers<[1], [0], [0], [1], [0, 0, 1, 1], [], []>} : vector<16x32xbf16>, vector<32x16xbf16>, vector<16x16xf32> -> vector<16x16xf32>
    %c0_38 = arith.constant 0 : index
    %c2_39 = arith.constant 2 : index
    %c0_40 = arith.constant 0 : index
    %c0_41 = arith.constant 0 : index
    %c0_42 = arith.constant 0 : index
    %48 = vector.load %arg5[%c0_38, %c2_39, %c0_40, %c0_41, %c0_42] : memref<2x3x2x1x16xf32, #tpu.memory_space<vmem>>, vector<1x1x1x1x16xf32>
    %49 = vector.shape_cast %48 : vector<1x1x1x1x16xf32> to vector<1x16xf32>
    %50 = vector.broadcast %49 : vector<1x16xf32> to vector<16x16xf32>
    %51 = arith.addf %47, %50 : vector<16x16xf32>
    %52 = vector.extract_strided_slice %35 {offsets = [0, 0], sizes = [8, 16], strides = [1, 1]} : vector<16x16xf32> to vector<8x16xf32>
    %53 = vector.extract_strided_slice %43 {offsets = [0, 0], sizes = [8, 16], strides = [1, 1]} : vector<16x16xf32> to vector<8x16xf32>
    %54 = vector.extract_strided_slice %51 {offsets = [0, 0], sizes = [8, 16], strides = [1, 1]} : vector<16x16xf32> to vector<8x16xf32>
    %55 = arith.truncf %52 : vector<8x16xf32> to vector<8x16xbf16>
    %56 = arith.truncf %53 : vector<8x16xf32> to vector<8x16xbf16>
    %cst_43 = arith.constant dense<0.000000e+00> : vector<8x8xf32>
    %57 = tpu.matmul %55, %56, %cst_43 {dimension_numbers = #tpu.dot_dimension_numbers<[1], [1], [0], [0], [0, 0, 1, 0], [], []>} : vector<8x16xbf16>, vector<8x16xbf16>, vector<8x8xf32> -> vector<8x8xf32>
    %c0_44 = arith.constant 0 : index
    %c0_45 = arith.constant 0 : index
    %c0_46 = arith.constant 0 : index
    %58 = vector.load %arg2[%c0_44, %c0_45, %c0_46] : memref<2x1x8xf32, #tpu.memory_space<vmem>>, vector<1x1x8xf32>
    %59 = vector.shape_cast %58 : vector<1x1x8xf32> to vector<1x8xf32>
    %60 = vector.broadcast %59 : vector<1x8xf32> to vector<8x8xf32>
    %61 = arith.addf %57, %60 : vector<8x8xf32>
    %cst_47 = arith.constant dense<0xFF800000> : vector<8xf32>
    %62 = vector.multi_reduction <maximumf>, %61, %cst_47 [1] : vector<8x8xf32> to vector<8xf32>
    %63 = vector.shape_cast %62 : vector<8xf32> to vector<8x1xf32>
    %64 = vector.broadcast %63 : vector<8x1xf32> to vector<8x8xf32>
    %65 = arith.subf %61, %64 : vector<8x8xf32>
    %66 = math.exp %65 : vector<8x8xf32>
    %cst_48 = arith.constant dense<0.000000e+00> : vector<8xf32>
    %67 = vector.multi_reduction <add>, %66, %cst_48 [1] : vector<8x8xf32> to vector<8xf32>
    %68 = vector.shape_cast %67 : vector<8xf32> to vector<8x1xf32>
    %69 = tpu.reciprocal %68 {approx = true} : vector<8x1xf32> -> vector<8x1xf32>
    %70 = vector.broadcast %69 : vector<8x1xf32> to vector<8x8xf32>
    %71 = arith.mulf %66, %70 : vector<8x8xf32>
    %72 = arith.truncf %71 : vector<8x8xf32> to vector<8x8xbf16>
    %73 = arith.truncf %54 : vector<8x16xf32> to vector<8x16xbf16>
    %cst_49 = arith.constant dense<0.000000e+00> : vector<8x16xf32>
    %74 = tpu.matmul %72, %73, %cst_49 {dimension_numbers = #tpu.dot_dimension_numbers<[1], [0], [0], [1], [0, 0, 1, 1], [], []>} : vector<8x8xbf16>, vector<8x16xbf16>, vector<8x16xf32> -> vector<8x16xf32>
    %75 = vector.extract_strided_slice %35 {offsets = [8, 0], sizes = [8, 16], strides = [1, 1]} : vector<16x16xf32> to vector<8x16xf32>
    %76 = vector.extract_strided_slice %43 {offsets = [8, 0], sizes = [8, 16], strides = [1, 1]} : vector<16x16xf32> to vector<8x16xf32>
    %77 = vector.extract_strided_slice %51 {offsets = [8, 0], sizes = [8, 16], strides = [1, 1]} : vector<16x16xf32> to vector<8x16xf32>
    %78 = arith.truncf %75 : vector<8x16xf32> to vector<8x16xbf16>
    %79 = arith.truncf %76 : vector<8x16xf32> to vector<8x16xbf16>
    %cst_50 = arith.constant dense<0.000000e+00> : vector<8x8xf32>
    %80 = tpu.matmul %78, %79, %cst_50 {dimension_numbers = #tpu.dot_dimension_numbers<[1], [1], [0], [0], [0, 0, 1, 0], [], []>} : vector<8x16xbf16>, vector<8x16xbf16>, vector<8x8xf32> -> vector<8x8xf32>
    %c1_51 = arith.constant 1 : index
    %c0_52 = arith.constant 0 : index
    %c0_53 = arith.constant 0 : index
    %81 = vector.load %arg2[%c1_51, %c0_52, %c0_53] : memref<2x1x8xf32, #tpu.memory_space<vmem>>, vector<1x1x8xf32>
    %82 = vector.shape_cast %81 : vector<1x1x8xf32> to vector<1x8xf32>
    %83 = vector.broadcast %82 : vector<1x8xf32> to vector<8x8xf32>
    %84 = arith.addf %80, %83 : vector<8x8xf32>
    %cst_54 = arith.constant dense<0xFF800000> : vector<8xf32>
    %85 = vector.multi_reduction <maximumf>, %84, %cst_54 [1] : vector<8x8xf32> to vector<8xf32>
    %86 = vector.shape_cast %85 : vector<8xf32> to vector<8x1xf32>
    %87 = vector.broadcast %86 : vector<8x1xf32> to vector<8x8xf32>
    %88 = arith.subf %84, %87 : vector<8x8xf32>
    %89 = math.exp %88 : vector<8x8xf32>
    %cst_55 = arith.constant dense<0.000000e+00> : vector<8xf32>
    %90 = vector.multi_reduction <add>, %89, %cst_55 [1] : vector<8x8xf32> to vector<8xf32>
    %91 = vector.shape_cast %90 : vector<8xf32> to vector<8x1xf32>
    %92 = tpu.reciprocal %91 {approx = true} : vector<8x1xf32> -> vector<8x1xf32>
    %93 = vector.broadcast %92 : vector<8x1xf32> to vector<8x8xf32>
    %94 = arith.mulf %89, %93 : vector<8x8xf32>
    %95 = arith.truncf %94 : vector<8x8xf32> to vector<8x8xbf16>
    %96 = arith.truncf %77 : vector<8x16xf32> to vector<8x16xbf16>
    %cst_56 = arith.constant dense<0.000000e+00> : vector<8x16xf32>
    %97 = tpu.matmul %95, %96, %cst_56 {dimension_numbers = #tpu.dot_dimension_numbers<[1], [0], [0], [1], [0, 0, 1, 1], [], []>} : vector<8x8xbf16>, vector<8x16xbf16>, vector<8x16xf32> -> vector<8x16xf32>
    %98 = tpu.concatenate %74, %97 in 0 : vector<8x16xf32>, vector<8x16xf32> -> vector<16x16xf32>
    %c0_57 = arith.constant 0 : index
    %c0_58 = arith.constant 0 : index
    %c0_59 = arith.constant 0 : index
    %c0_60 = arith.constant 0 : index
    %99 = vector.load %arg6[%c0_57, %c0_58, %c0_59, %c0_60] : memref<2x2x16x32xbf16, #tpu.memory_space<vmem>>, vector<1x1x16x32xbf16>
    %100 = vector.shape_cast %99 : vector<1x1x16x32xbf16> to vector<16x32xbf16>
    %101 = arith.truncf %98 : vector<16x16xf32> to vector<16x16xbf16>
    %cst_61 = arith.constant dense<0.000000e+00> : vector<16x32xf32>
    %102 = tpu.matmul %101, %100, %cst_61 {dimension_numbers = #tpu.dot_dimension_numbers<[1], [0], [0], [1], [0, 0, 1, 1], [], []>} : vector<16x16xbf16>, vector<16x32xbf16>, vector<16x32xf32> -> vector<16x32xf32>
    %103 = arith.addf %27, %102 : vector<16x32xf32>
    %c0_62 = arith.constant 0 : index
    %c0_63 = arith.constant 0 : index
    %c1_64 = arith.constant 1 : index
    %c0_65 = arith.constant 0 : index
    %c0_66 = arith.constant 0 : index
    %104 = vector.load %arg4[%c0_62, %c0_63, %c1_64, %c0_65, %c0_66] : memref<2x3x2x32x16xbf16, #tpu.memory_space<vmem>>, vector<1x1x1x32x16xbf16>
    %105 = vector.shape_cast %104 : vector<1x1x1x32x16xbf16> to vector<32x16xbf16>
    %106 = arith.truncf %26 : vector<16x32xf32> to vector<16x32xbf16>
    %cst_67 = arith.constant dense<0.000000e+00> : vector<16x16xf32>
    %107 = tpu.matmul %106, %105, %cst_67 {dimension_numbers = #tpu.dot_dimension_numbers<[1], [0], [0], [1], [0, 0, 1, 1], [], []>} : vector<16x32xbf16>, vector<32x16xbf16>, vector<16x16xf32> -> vector<16x16xf32>
    %c0_68 = arith.constant 0 : index
    %c0_69 = arith.constant 0 : index
    %c1_70 = arith.constant 1 : index
    %c0_71 = arith.constant 0 : index
    %c0_72 = arith.constant 0 : index
    %108 = vector.load %arg5[%c0_68, %c0_69, %c1_70, %c0_71, %c0_72] : memref<2x3x2x1x16xf32, #tpu.memory_space<vmem>>, vector<1x1x1x1x16xf32>
    %109 = vector.shape_cast %108 : vector<1x1x1x1x16xf32> to vector<1x16xf32>
    %110 = vector.broadcast %109 : vector<1x16xf32> to vector<16x16xf32>
    %111 = arith.addf %107, %110 : vector<16x16xf32>
    %c0_73 = arith.constant 0 : index
    %c1_74 = arith.constant 1 : index
    %c1_75 = arith.constant 1 : index
    %c0_76 = arith.constant 0 : index
    %c0_77 = arith.constant 0 : index
    %112 = vector.load %arg4[%c0_73, %c1_74, %c1_75, %c0_76, %c0_77] : memref<2x3x2x32x16xbf16, #tpu.memory_space<vmem>>, vector<1x1x1x32x16xbf16>
    %113 = vector.shape_cast %112 : vector<1x1x1x32x16xbf16> to vector<32x16xbf16>
    %114 = arith.truncf %26 : vector<16x32xf32> to vector<16x32xbf16>
    %cst_78 = arith.constant dense<0.000000e+00> : vector<16x16xf32>
    %115 = tpu.matmul %114, %113, %cst_78 {dimension_numbers = #tpu.dot_dimension_numbers<[1], [0], [0], [1], [0, 0, 1, 1], [], []>} : vector<16x32xbf16>, vector<32x16xbf16>, vector<16x16xf32> -> vector<16x16xf32>
    %c0_79 = arith.constant 0 : index
    %c1_80 = arith.constant 1 : index
    %c1_81 = arith.constant 1 : index
    %c0_82 = arith.constant 0 : index
    %c0_83 = arith.constant 0 : index
    %116 = vector.load %arg5[%c0_79, %c1_80, %c1_81, %c0_82, %c0_83] : memref<2x3x2x1x16xf32, #tpu.memory_space<vmem>>, vector<1x1x1x1x16xf32>
    %117 = vector.shape_cast %116 : vector<1x1x1x1x16xf32> to vector<1x16xf32>
    %118 = vector.broadcast %117 : vector<1x16xf32> to vector<16x16xf32>
    %119 = arith.addf %115, %118 : vector<16x16xf32>
    %c0_84 = arith.constant 0 : index
    %c2_85 = arith.constant 2 : index
    %c1_86 = arith.constant 1 : index
    %c0_87 = arith.constant 0 : index
    %c0_88 = arith.constant 0 : index
    %120 = vector.load %arg4[%c0_84, %c2_85, %c1_86, %c0_87, %c0_88] : memref<2x3x2x32x16xbf16, #tpu.memory_space<vmem>>, vector<1x1x1x32x16xbf16>
    %121 = vector.shape_cast %120 : vector<1x1x1x32x16xbf16> to vector<32x16xbf16>
    %122 = arith.truncf %26 : vector<16x32xf32> to vector<16x32xbf16>
    %cst_89 = arith.constant dense<0.000000e+00> : vector<16x16xf32>
    %123 = tpu.matmul %122, %121, %cst_89 {dimension_numbers = #tpu.dot_dimension_numbers<[1], [0], [0], [1], [0, 0, 1, 1], [], []>} : vector<16x32xbf16>, vector<32x16xbf16>, vector<16x16xf32> -> vector<16x16xf32>
    %c0_90 = arith.constant 0 : index
    %c2_91 = arith.constant 2 : index
    %c1_92 = arith.constant 1 : index
    %c0_93 = arith.constant 0 : index
    %c0_94 = arith.constant 0 : index
    %124 = vector.load %arg5[%c0_90, %c2_91, %c1_92, %c0_93, %c0_94] : memref<2x3x2x1x16xf32, #tpu.memory_space<vmem>>, vector<1x1x1x1x16xf32>
    %125 = vector.shape_cast %124 : vector<1x1x1x1x16xf32> to vector<1x16xf32>
    %126 = vector.broadcast %125 : vector<1x16xf32> to vector<16x16xf32>
    %127 = arith.addf %123, %126 : vector<16x16xf32>
    %128 = vector.extract_strided_slice %111 {offsets = [0, 0], sizes = [8, 16], strides = [1, 1]} : vector<16x16xf32> to vector<8x16xf32>
    %129 = vector.extract_strided_slice %119 {offsets = [0, 0], sizes = [8, 16], strides = [1, 1]} : vector<16x16xf32> to vector<8x16xf32>
    %130 = vector.extract_strided_slice %127 {offsets = [0, 0], sizes = [8, 16], strides = [1, 1]} : vector<16x16xf32> to vector<8x16xf32>
    %131 = arith.truncf %128 : vector<8x16xf32> to vector<8x16xbf16>
    %132 = arith.truncf %129 : vector<8x16xf32> to vector<8x16xbf16>
    %cst_95 = arith.constant dense<0.000000e+00> : vector<8x8xf32>
    %133 = tpu.matmul %131, %132, %cst_95 {dimension_numbers = #tpu.dot_dimension_numbers<[1], [1], [0], [0], [0, 0, 1, 0], [], []>} : vector<8x16xbf16>, vector<8x16xbf16>, vector<8x8xf32> -> vector<8x8xf32>
    %c0_96 = arith.constant 0 : index
    %c0_97 = arith.constant 0 : index
    %c0_98 = arith.constant 0 : index
    %134 = vector.load %arg2[%c0_96, %c0_97, %c0_98] : memref<2x1x8xf32, #tpu.memory_space<vmem>>, vector<1x1x8xf32>
    %135 = vector.shape_cast %134 : vector<1x1x8xf32> to vector<1x8xf32>
    %136 = vector.broadcast %135 : vector<1x8xf32> to vector<8x8xf32>
    %137 = arith.addf %133, %136 : vector<8x8xf32>
    %cst_99 = arith.constant dense<0xFF800000> : vector<8xf32>
    %138 = vector.multi_reduction <maximumf>, %137, %cst_99 [1] : vector<8x8xf32> to vector<8xf32>
    %139 = vector.shape_cast %138 : vector<8xf32> to vector<8x1xf32>
    %140 = vector.broadcast %139 : vector<8x1xf32> to vector<8x8xf32>
    %141 = arith.subf %137, %140 : vector<8x8xf32>
    %142 = math.exp %141 : vector<8x8xf32>
    %cst_100 = arith.constant dense<0.000000e+00> : vector<8xf32>
    %143 = vector.multi_reduction <add>, %142, %cst_100 [1] : vector<8x8xf32> to vector<8xf32>
    %144 = vector.shape_cast %143 : vector<8xf32> to vector<8x1xf32>
    %145 = tpu.reciprocal %144 {approx = true} : vector<8x1xf32> -> vector<8x1xf32>
    %146 = vector.broadcast %145 : vector<8x1xf32> to vector<8x8xf32>
    %147 = arith.mulf %142, %146 : vector<8x8xf32>
    %148 = arith.truncf %147 : vector<8x8xf32> to vector<8x8xbf16>
    %149 = arith.truncf %130 : vector<8x16xf32> to vector<8x16xbf16>
    %cst_101 = arith.constant dense<0.000000e+00> : vector<8x16xf32>
    %150 = tpu.matmul %148, %149, %cst_101 {dimension_numbers = #tpu.dot_dimension_numbers<[1], [0], [0], [1], [0, 0, 1, 1], [], []>} : vector<8x8xbf16>, vector<8x16xbf16>, vector<8x16xf32> -> vector<8x16xf32>
    %151 = vector.extract_strided_slice %111 {offsets = [8, 0], sizes = [8, 16], strides = [1, 1]} : vector<16x16xf32> to vector<8x16xf32>
    %152 = vector.extract_strided_slice %119 {offsets = [8, 0], sizes = [8, 16], strides = [1, 1]} : vector<16x16xf32> to vector<8x16xf32>
    %153 = vector.extract_strided_slice %127 {offsets = [8, 0], sizes = [8, 16], strides = [1, 1]} : vector<16x16xf32> to vector<8x16xf32>
    %154 = arith.truncf %151 : vector<8x16xf32> to vector<8x16xbf16>
    %155 = arith.truncf %152 : vector<8x16xf32> to vector<8x16xbf16>
    %cst_102 = arith.constant dense<0.000000e+00> : vector<8x8xf32>
    %156 = tpu.matmul %154, %155, %cst_102 {dimension_numbers = #tpu.dot_dimension_numbers<[1], [1], [0], [0], [0, 0, 1, 0], [], []>} : vector<8x16xbf16>, vector<8x16xbf16>, vector<8x8xf32> -> vector<8x8xf32>
    %c1_103 = arith.constant 1 : index
    %c0_104 = arith.constant 0 : index
    %c0_105 = arith.constant 0 : index
    %157 = vector.load %arg2[%c1_103, %c0_104, %c0_105] : memref<2x1x8xf32, #tpu.memory_space<vmem>>, vector<1x1x8xf32>
    %158 = vector.shape_cast %157 : vector<1x1x8xf32> to vector<1x8xf32>
    %159 = vector.broadcast %158 : vector<1x8xf32> to vector<8x8xf32>
    %160 = arith.addf %156, %159 : vector<8x8xf32>
    %cst_106 = arith.constant dense<0xFF800000> : vector<8xf32>
    %161 = vector.multi_reduction <maximumf>, %160, %cst_106 [1] : vector<8x8xf32> to vector<8xf32>
    %162 = vector.shape_cast %161 : vector<8xf32> to vector<8x1xf32>
    %163 = vector.broadcast %162 : vector<8x1xf32> to vector<8x8xf32>
    %164 = arith.subf %160, %163 : vector<8x8xf32>
    %165 = math.exp %164 : vector<8x8xf32>
    %cst_107 = arith.constant dense<0.000000e+00> : vector<8xf32>
    %166 = vector.multi_reduction <add>, %165, %cst_107 [1] : vector<8x8xf32> to vector<8xf32>
    %167 = vector.shape_cast %166 : vector<8xf32> to vector<8x1xf32>
    %168 = tpu.reciprocal %167 {approx = true} : vector<8x1xf32> -> vector<8x1xf32>
    %169 = vector.broadcast %168 : vector<8x1xf32> to vector<8x8xf32>
    %170 = arith.mulf %165, %169 : vector<8x8xf32>
    %171 = arith.truncf %170 : vector<8x8xf32> to vector<8x8xbf16>
    %172 = arith.truncf %153 : vector<8x16xf32> to vector<8x16xbf16>
    %cst_108 = arith.constant dense<0.000000e+00> : vector<8x16xf32>
    %173 = tpu.matmul %171, %172, %cst_108 {dimension_numbers = #tpu.dot_dimension_numbers<[1], [0], [0], [1], [0, 0, 1, 1], [], []>} : vector<8x8xbf16>, vector<8x16xbf16>, vector<8x16xf32> -> vector<8x16xf32>
    %174 = tpu.concatenate %150, %173 in 0 : vector<8x16xf32>, vector<8x16xf32> -> vector<16x16xf32>
    %c0_109 = arith.constant 0 : index
    %c1_110 = arith.constant 1 : index
    %c0_111 = arith.constant 0 : index
    %c0_112 = arith.constant 0 : index
    %175 = vector.load %arg6[%c0_109, %c1_110, %c0_111, %c0_112] : memref<2x2x16x32xbf16, #tpu.memory_space<vmem>>, vector<1x1x16x32xbf16>
    %176 = vector.shape_cast %175 : vector<1x1x16x32xbf16> to vector<16x32xbf16>
    %177 = arith.truncf %174 : vector<16x16xf32> to vector<16x16xbf16>
    %cst_113 = arith.constant dense<0.000000e+00> : vector<16x32xf32>
    %178 = tpu.matmul %177, %176, %cst_113 {dimension_numbers = #tpu.dot_dimension_numbers<[1], [0], [0], [1], [0, 0, 1, 1], [], []>} : vector<16x16xbf16>, vector<16x32xbf16>, vector<16x32xf32> -> vector<16x32xf32>
    %179 = arith.addf %103, %178 : vector<16x32xf32>
    %c0_114 = arith.constant 0 : index
    %c0_115 = arith.constant 0 : index
    %c0_116 = arith.constant 0 : index
    %180 = vector.load %arg7[%c0_114, %c0_115, %c0_116] : memref<2x1x32xf32, #tpu.memory_space<vmem>>, vector<1x1x32xf32>
    %181 = vector.shape_cast %180 : vector<1x1x32xf32> to vector<1x32xf32>
    %182 = vector.broadcast %181 : vector<1x32xf32> to vector<16x32xf32>
    %183 = arith.addf %179, %182 : vector<16x32xf32>
    %184 = arith.addf %26, %183 : vector<16x32xf32>
    %c0_117 = arith.constant 0 : index
    %c0_118 = arith.constant 0 : index
    %c0_119 = arith.constant 0 : index
    %c0_120 = arith.constant 0 : index
    %185 = vector.load %arg8[%c0_117, %c0_118, %c0_119, %c0_120] : memref<2x2x1x32xf32, #tpu.memory_space<vmem>>, vector<1x1x1x32xf32>
    %186 = vector.shape_cast %185 : vector<1x1x1x32xf32> to vector<1x32xf32>
    %c0_121 = arith.constant 0 : index
    %c1_122 = arith.constant 1 : index
    %c0_123 = arith.constant 0 : index
    %c0_124 = arith.constant 0 : index
    %187 = vector.load %arg8[%c0_121, %c1_122, %c0_123, %c0_124] : memref<2x2x1x32xf32, #tpu.memory_space<vmem>>, vector<1x1x1x32xf32>
    %188 = vector.shape_cast %187 : vector<1x1x1x32xf32> to vector<1x32xf32>
    %cst_125 = arith.constant dense<0.000000e+00> : vector<16xf32>
    %189 = vector.multi_reduction <add>, %184, %cst_125 [1] : vector<16x32xf32> to vector<16xf32>
    %190 = vector.shape_cast %189 : vector<16xf32> to vector<16x1xf32>
    %cst_126 = arith.constant 3.200000e+01 : f32
    %191 = vector.broadcast %cst_126 : f32 to vector<16x1xf32>
    %192 = arith.divf %190, %191 : vector<16x1xf32>
    %193 = vector.broadcast %192 : vector<16x1xf32> to vector<16x32xf32>
    %194 = arith.subf %184, %193 : vector<16x32xf32>
    %195 = arith.mulf %194, %194 : vector<16x32xf32>
    %cst_127 = arith.constant dense<0.000000e+00> : vector<16xf32>
    %196 = vector.multi_reduction <add>, %195, %cst_127 [1] : vector<16x32xf32> to vector<16xf32>
    %197 = vector.shape_cast %196 : vector<16xf32> to vector<16x1xf32>
    %cst_128 = arith.constant 3.200000e+01 : f32
    %198 = vector.broadcast %cst_128 : f32 to vector<16x1xf32>
    %199 = arith.divf %197, %198 : vector<16x1xf32>
    %200 = vector.broadcast %192 : vector<16x1xf32> to vector<16x32xf32>
    %201 = arith.subf %184, %200 : vector<16x32xf32>
    %cst_129 = arith.constant 9.99999996E-13 : f32
    %202 = vector.broadcast %cst_129 : f32 to vector<16x1xf32>
    %203 = arith.addf %199, %202 : vector<16x1xf32>
    %204 = math.rsqrt %203 : vector<16x1xf32>
    %205 = vector.broadcast %204 : vector<16x1xf32> to vector<16x32xf32>
    %206 = arith.mulf %201, %205 : vector<16x32xf32>
    %207 = vector.broadcast %186 : vector<1x32xf32> to vector<16x32xf32>
    %208 = arith.mulf %206, %207 : vector<16x32xf32>
    %209 = vector.broadcast %188 : vector<1x32xf32> to vector<16x32xf32>
    %210 = arith.addf %208, %209 : vector<16x32xf32>
    %c0_130 = arith.constant 0 : index
    %c0_131 = arith.constant 0 : index
    %c0_132 = arith.constant 0 : index
    %211 = vector.load %arg9[%c0_130, %c0_131, %c0_132] : memref<2x32x64xbf16, #tpu.memory_space<vmem>>, vector<1x32x64xbf16>
    %212 = vector.shape_cast %211 : vector<1x32x64xbf16> to vector<32x64xbf16>
    %213 = arith.truncf %210 : vector<16x32xf32> to vector<16x32xbf16>
    %cst_133 = arith.constant dense<0.000000e+00> : vector<16x64xf32>
    %214 = tpu.matmul %213, %212, %cst_133 {dimension_numbers = #tpu.dot_dimension_numbers<[1], [0], [0], [1], [0, 0, 1, 1], [], []>} : vector<16x32xbf16>, vector<32x64xbf16>, vector<16x64xf32> -> vector<16x64xf32>
    %c0_134 = arith.constant 0 : index
    %c0_135 = arith.constant 0 : index
    %c0_136 = arith.constant 0 : index
    %215 = vector.load %arg10[%c0_134, %c0_135, %c0_136] : memref<2x1x64xf32, #tpu.memory_space<vmem>>, vector<1x1x64xf32>
    %216 = vector.shape_cast %215 : vector<1x1x64xf32> to vector<1x64xf32>
    %217 = vector.broadcast %216 : vector<1x64xf32> to vector<16x64xf32>
    %218 = arith.addf %214, %217 : vector<16x64xf32>
    %cst_137 = arith.constant 5.000000e-01 : f32
    %219 = vector.broadcast %cst_137 : f32 to vector<16x64xf32>
    %220 = arith.mulf %219, %218 : vector<16x64xf32>
    %cst_138 = arith.constant 0.707106769 : f32
    %221 = vector.broadcast %cst_138 : f32 to vector<16x64xf32>
    %222 = arith.mulf %218, %221 : vector<16x64xf32>
    %223 = math.erf %222 : vector<16x64xf32>
    %cst_139 = arith.constant 1.000000e+00 : f32
    %224 = vector.broadcast %cst_139 : f32 to vector<16x64xf32>
    %225 = arith.addf %224, %223 : vector<16x64xf32>
    %226 = arith.mulf %220, %225 : vector<16x64xf32>
    %c0_140 = arith.constant 0 : index
    %c0_141 = arith.constant 0 : index
    %c0_142 = arith.constant 0 : index
    %227 = vector.load %arg11[%c0_140, %c0_141, %c0_142] : memref<2x64x32xbf16, #tpu.memory_space<vmem>>, vector<1x64x32xbf16>
    %228 = vector.shape_cast %227 : vector<1x64x32xbf16> to vector<64x32xbf16>
    %229 = arith.truncf %226 : vector<16x64xf32> to vector<16x64xbf16>
    %cst_143 = arith.constant dense<0.000000e+00> : vector<16x32xf32>
    %230 = tpu.matmul %229, %228, %cst_143 {dimension_numbers = #tpu.dot_dimension_numbers<[1], [0], [0], [1], [0, 0, 1, 1], [], []>} : vector<16x64xbf16>, vector<64x32xbf16>, vector<16x32xf32> -> vector<16x32xf32>
    %c0_144 = arith.constant 0 : index
    %c0_145 = arith.constant 0 : index
    %c0_146 = arith.constant 0 : index
    %231 = vector.load %arg12[%c0_144, %c0_145, %c0_146] : memref<2x1x32xf32, #tpu.memory_space<vmem>>, vector<1x1x32xf32>
    %232 = vector.shape_cast %231 : vector<1x1x32xf32> to vector<1x32xf32>
    %233 = vector.broadcast %232 : vector<1x32xf32> to vector<16x32xf32>
    %234 = arith.addf %230, %233 : vector<16x32xf32>
    %235 = arith.addf %210, %234 : vector<16x32xf32>
    %c0_147 = arith.constant 0 : index
    %c0_148 = arith.constant 0 : index
    %c0_149 = arith.constant 0 : index
    %c0_150 = arith.constant 0 : index
    %236 = vector.load %arg13[%c0_147, %c0_148, %c0_149, %c0_150] : memref<2x2x1x32xf32, #tpu.memory_space<vmem>>, vector<1x1x1x32xf32>
    %237 = vector.shape_cast %236 : vector<1x1x1x32xf32> to vector<1x32xf32>
    %c0_151 = arith.constant 0 : index
    %c1_152 = arith.constant 1 : index
    %c0_153 = arith.constant 0 : index
    %c0_154 = arith.constant 0 : index
    %238 = vector.load %arg13[%c0_151, %c1_152, %c0_153, %c0_154] : memref<2x2x1x32xf32, #tpu.memory_space<vmem>>, vector<1x1x1x32xf32>
    %239 = vector.shape_cast %238 : vector<1x1x1x32xf32> to vector<1x32xf32>
    %cst_155 = arith.constant dense<0.000000e+00> : vector<16xf32>
    %240 = vector.multi_reduction <add>, %235, %cst_155 [1] : vector<16x32xf32> to vector<16xf32>
    %241 = vector.shape_cast %240 : vector<16xf32> to vector<16x1xf32>
    %cst_156 = arith.constant 3.200000e+01 : f32
    %242 = vector.broadcast %cst_156 : f32 to vector<16x1xf32>
    %243 = arith.divf %241, %242 : vector<16x1xf32>
    %244 = vector.broadcast %243 : vector<16x1xf32> to vector<16x32xf32>
    %245 = arith.subf %235, %244 : vector<16x32xf32>
    %246 = arith.mulf %245, %245 : vector<16x32xf32>
    %cst_157 = arith.constant dense<0.000000e+00> : vector<16xf32>
    %247 = vector.multi_reduction <add>, %246, %cst_157 [1] : vector<16x32xf32> to vector<16xf32>
    %248 = vector.shape_cast %247 : vector<16xf32> to vector<16x1xf32>
    %cst_158 = arith.constant 3.200000e+01 : f32
    %249 = vector.broadcast %cst_158 : f32 to vector<16x1xf32>
    %250 = arith.divf %248, %249 : vector<16x1xf32>
    %251 = vector.broadcast %243 : vector<16x1xf32> to vector<16x32xf32>
    %252 = arith.subf %235, %251 : vector<16x32xf32>
    %cst_159 = arith.constant 9.99999996E-13 : f32
    %253 = vector.broadcast %cst_159 : f32 to vector<16x1xf32>
    %254 = arith.addf %250, %253 : vector<16x1xf32>
    %255 = math.rsqrt %254 : vector<16x1xf32>
    %256 = vector.broadcast %255 : vector<16x1xf32> to vector<16x32xf32>
    %257 = arith.mulf %252, %256 : vector<16x32xf32>
    %258 = vector.broadcast %237 : vector<1x32xf32> to vector<16x32xf32>
    %259 = arith.mulf %257, %258 : vector<16x32xf32>
    %260 = vector.broadcast %239 : vector<1x32xf32> to vector<16x32xf32>
    %261 = arith.addf %259, %260 : vector<16x32xf32>
    %cst_160 = arith.constant 0.000000e+00 : f32
    %262 = vector.broadcast %cst_160 : f32 to vector<16x32xf32>
    %c1_161 = arith.constant 1 : index
    %c0_162 = arith.constant 0 : index
    %c0_163 = arith.constant 0 : index
    %c0_164 = arith.constant 0 : index
    %c0_165 = arith.constant 0 : index
    %263 = vector.load %arg4[%c1_161, %c0_162, %c0_163, %c0_164, %c0_165] : memref<2x3x2x32x16xbf16, #tpu.memory_space<vmem>>, vector<1x1x1x32x16xbf16>
    %264 = vector.shape_cast %263 : vector<1x1x1x32x16xbf16> to vector<32x16xbf16>
    %265 = arith.truncf %261 : vector<16x32xf32> to vector<16x32xbf16>
    %cst_166 = arith.constant dense<0.000000e+00> : vector<16x16xf32>
    %266 = tpu.matmul %265, %264, %cst_166 {dimension_numbers = #tpu.dot_dimension_numbers<[1], [0], [0], [1], [0, 0, 1, 1], [], []>} : vector<16x32xbf16>, vector<32x16xbf16>, vector<16x16xf32> -> vector<16x16xf32>
    %c1_167 = arith.constant 1 : index
    %c0_168 = arith.constant 0 : index
    %c0_169 = arith.constant 0 : index
    %c0_170 = arith.constant 0 : index
    %c0_171 = arith.constant 0 : index
    %267 = vector.load %arg5[%c1_167, %c0_168, %c0_169, %c0_170, %c0_171] : memref<2x3x2x1x16xf32, #tpu.memory_space<vmem>>, vector<1x1x1x1x16xf32>
    %268 = vector.shape_cast %267 : vector<1x1x1x1x16xf32> to vector<1x16xf32>
    %269 = vector.broadcast %268 : vector<1x16xf32> to vector<16x16xf32>
    %270 = arith.addf %266, %269 : vector<16x16xf32>
    %c1_172 = arith.constant 1 : index
    %c1_173 = arith.constant 1 : index
    %c0_174 = arith.constant 0 : index
    %c0_175 = arith.constant 0 : index
    %c0_176 = arith.constant 0 : index
    %271 = vector.load %arg4[%c1_172, %c1_173, %c0_174, %c0_175, %c0_176] : memref<2x3x2x32x16xbf16, #tpu.memory_space<vmem>>, vector<1x1x1x32x16xbf16>
    %272 = vector.shape_cast %271 : vector<1x1x1x32x16xbf16> to vector<32x16xbf16>
    %273 = arith.truncf %261 : vector<16x32xf32> to vector<16x32xbf16>
    %cst_177 = arith.constant dense<0.000000e+00> : vector<16x16xf32>
    %274 = tpu.matmul %273, %272, %cst_177 {dimension_numbers = #tpu.dot_dimension_numbers<[1], [0], [0], [1], [0, 0, 1, 1], [], []>} : vector<16x32xbf16>, vector<32x16xbf16>, vector<16x16xf32> -> vector<16x16xf32>
    %c1_178 = arith.constant 1 : index
    %c1_179 = arith.constant 1 : index
    %c0_180 = arith.constant 0 : index
    %c0_181 = arith.constant 0 : index
    %c0_182 = arith.constant 0 : index
    %275 = vector.load %arg5[%c1_178, %c1_179, %c0_180, %c0_181, %c0_182] : memref<2x3x2x1x16xf32, #tpu.memory_space<vmem>>, vector<1x1x1x1x16xf32>
    %276 = vector.shape_cast %275 : vector<1x1x1x1x16xf32> to vector<1x16xf32>
    %277 = vector.broadcast %276 : vector<1x16xf32> to vector<16x16xf32>
    %278 = arith.addf %274, %277 : vector<16x16xf32>
    %c1_183 = arith.constant 1 : index
    %c2_184 = arith.constant 2 : index
    %c0_185 = arith.constant 0 : index
    %c0_186 = arith.constant 0 : index
    %c0_187 = arith.constant 0 : index
    %279 = vector.load %arg4[%c1_183, %c2_184, %c0_185, %c0_186, %c0_187] : memref<2x3x2x32x16xbf16, #tpu.memory_space<vmem>>, vector<1x1x1x32x16xbf16>
    %280 = vector.shape_cast %279 : vector<1x1x1x32x16xbf16> to vector<32x16xbf16>
    %281 = arith.truncf %261 : vector<16x32xf32> to vector<16x32xbf16>
    %cst_188 = arith.constant dense<0.000000e+00> : vector<16x16xf32>
    %282 = tpu.matmul %281, %280, %cst_188 {dimension_numbers = #tpu.dot_dimension_numbers<[1], [0], [0], [1], [0, 0, 1, 1], [], []>} : vector<16x32xbf16>, vector<32x16xbf16>, vector<16x16xf32> -> vector<16x16xf32>
    %c1_189 = arith.constant 1 : index
    %c2_190 = arith.constant 2 : index
    %c0_191 = arith.constant 0 : index
    %c0_192 = arith.constant 0 : index
    %c0_193 = arith.constant 0 : index
    %283 = vector.load %arg5[%c1_189, %c2_190, %c0_191, %c0_192, %c0_193] : memref<2x3x2x1x16xf32, #tpu.memory_space<vmem>>, vector<1x1x1x1x16xf32>
    %284 = vector.shape_cast %283 : vector<1x1x1x1x16xf32> to vector<1x16xf32>
    %285 = vector.broadcast %284 : vector<1x16xf32> to vector<16x16xf32>
    %286 = arith.addf %282, %285 : vector<16x16xf32>
    %287 = vector.extract_strided_slice %270 {offsets = [0, 0], sizes = [8, 16], strides = [1, 1]} : vector<16x16xf32> to vector<8x16xf32>
    %288 = vector.extract_strided_slice %278 {offsets = [0, 0], sizes = [8, 16], strides = [1, 1]} : vector<16x16xf32> to vector<8x16xf32>
    %289 = vector.extract_strided_slice %286 {offsets = [0, 0], sizes = [8, 16], strides = [1, 1]} : vector<16x16xf32> to vector<8x16xf32>
    %290 = arith.truncf %287 : vector<8x16xf32> to vector<8x16xbf16>
    %291 = arith.truncf %288 : vector<8x16xf32> to vector<8x16xbf16>
    %cst_194 = arith.constant dense<0.000000e+00> : vector<8x8xf32>
    %292 = tpu.matmul %290, %291, %cst_194 {dimension_numbers = #tpu.dot_dimension_numbers<[1], [1], [0], [0], [0, 0, 1, 0], [], []>} : vector<8x16xbf16>, vector<8x16xbf16>, vector<8x8xf32> -> vector<8x8xf32>
    %c0_195 = arith.constant 0 : index
    %c0_196 = arith.constant 0 : index
    %c0_197 = arith.constant 0 : index
    %293 = vector.load %arg2[%c0_195, %c0_196, %c0_197] : memref<2x1x8xf32, #tpu.memory_space<vmem>>, vector<1x1x8xf32>
    %294 = vector.shape_cast %293 : vector<1x1x8xf32> to vector<1x8xf32>
    %295 = vector.broadcast %294 : vector<1x8xf32> to vector<8x8xf32>
    %296 = arith.addf %292, %295 : vector<8x8xf32>
    %cst_198 = arith.constant dense<0xFF800000> : vector<8xf32>
    %297 = vector.multi_reduction <maximumf>, %296, %cst_198 [1] : vector<8x8xf32> to vector<8xf32>
    %298 = vector.shape_cast %297 : vector<8xf32> to vector<8x1xf32>
    %299 = vector.broadcast %298 : vector<8x1xf32> to vector<8x8xf32>
    %300 = arith.subf %296, %299 : vector<8x8xf32>
    %301 = math.exp %300 : vector<8x8xf32>
    %cst_199 = arith.constant dense<0.000000e+00> : vector<8xf32>
    %302 = vector.multi_reduction <add>, %301, %cst_199 [1] : vector<8x8xf32> to vector<8xf32>
    %303 = vector.shape_cast %302 : vector<8xf32> to vector<8x1xf32>
    %304 = tpu.reciprocal %303 {approx = true} : vector<8x1xf32> -> vector<8x1xf32>
    %305 = vector.broadcast %304 : vector<8x1xf32> to vector<8x8xf32>
    %306 = arith.mulf %301, %305 : vector<8x8xf32>
    %307 = arith.truncf %306 : vector<8x8xf32> to vector<8x8xbf16>
    %308 = arith.truncf %289 : vector<8x16xf32> to vector<8x16xbf16>
    %cst_200 = arith.constant dense<0.000000e+00> : vector<8x16xf32>
    %309 = tpu.matmul %307, %308, %cst_200 {dimension_numbers = #tpu.dot_dimension_numbers<[1], [0], [0], [1], [0, 0, 1, 1], [], []>} : vector<8x8xbf16>, vector<8x16xbf16>, vector<8x16xf32> -> vector<8x16xf32>
    %310 = vector.extract_strided_slice %270 {offsets = [8, 0], sizes = [8, 16], strides = [1, 1]} : vector<16x16xf32> to vector<8x16xf32>
    %311 = vector.extract_strided_slice %278 {offsets = [8, 0], sizes = [8, 16], strides = [1, 1]} : vector<16x16xf32> to vector<8x16xf32>
    %312 = vector.extract_strided_slice %286 {offsets = [8, 0], sizes = [8, 16], strides = [1, 1]} : vector<16x16xf32> to vector<8x16xf32>
    %313 = arith.truncf %310 : vector<8x16xf32> to vector<8x16xbf16>
    %314 = arith.truncf %311 : vector<8x16xf32> to vector<8x16xbf16>
    %cst_201 = arith.constant dense<0.000000e+00> : vector<8x8xf32>
    %315 = tpu.matmul %313, %314, %cst_201 {dimension_numbers = #tpu.dot_dimension_numbers<[1], [1], [0], [0], [0, 0, 1, 0], [], []>} : vector<8x16xbf16>, vector<8x16xbf16>, vector<8x8xf32> -> vector<8x8xf32>
    %c1_202 = arith.constant 1 : index
    %c0_203 = arith.constant 0 : index
    %c0_204 = arith.constant 0 : index
    %316 = vector.load %arg2[%c1_202, %c0_203, %c0_204] : memref<2x1x8xf32, #tpu.memory_space<vmem>>, vector<1x1x8xf32>
    %317 = vector.shape_cast %316 : vector<1x1x8xf32> to vector<1x8xf32>
    %318 = vector.broadcast %317 : vector<1x8xf32> to vector<8x8xf32>
    %319 = arith.addf %315, %318 : vector<8x8xf32>
    %cst_205 = arith.constant dense<0xFF800000> : vector<8xf32>
    %320 = vector.multi_reduction <maximumf>, %319, %cst_205 [1] : vector<8x8xf32> to vector<8xf32>
    %321 = vector.shape_cast %320 : vector<8xf32> to vector<8x1xf32>
    %322 = vector.broadcast %321 : vector<8x1xf32> to vector<8x8xf32>
    %323 = arith.subf %319, %322 : vector<8x8xf32>
    %324 = math.exp %323 : vector<8x8xf32>
    %cst_206 = arith.constant dense<0.000000e+00> : vector<8xf32>
    %325 = vector.multi_reduction <add>, %324, %cst_206 [1] : vector<8x8xf32> to vector<8xf32>
    %326 = vector.shape_cast %325 : vector<8xf32> to vector<8x1xf32>
    %327 = tpu.reciprocal %326 {approx = true} : vector<8x1xf32> -> vector<8x1xf32>
    %328 = vector.broadcast %327 : vector<8x1xf32> to vector<8x8xf32>
    %329 = arith.mulf %324, %328 : vector<8x8xf32>
    %330 = arith.truncf %329 : vector<8x8xf32> to vector<8x8xbf16>
    %331 = arith.truncf %312 : vector<8x16xf32> to vector<8x16xbf16>
    %cst_207 = arith.constant dense<0.000000e+00> : vector<8x16xf32>
    %332 = tpu.matmul %330, %331, %cst_207 {dimension_numbers = #tpu.dot_dimension_numbers<[1], [0], [0], [1], [0, 0, 1, 1], [], []>} : vector<8x8xbf16>, vector<8x16xbf16>, vector<8x16xf32> -> vector<8x16xf32>
    %333 = tpu.concatenate %309, %332 in 0 : vector<8x16xf32>, vector<8x16xf32> -> vector<16x16xf32>
    %c1_208 = arith.constant 1 : index
    %c0_209 = arith.constant 0 : index
    %c0_210 = arith.constant 0 : index
    %c0_211 = arith.constant 0 : index
    %334 = vector.load %arg6[%c1_208, %c0_209, %c0_210, %c0_211] : memref<2x2x16x32xbf16, #tpu.memory_space<vmem>>, vector<1x1x16x32xbf16>
    %335 = vector.shape_cast %334 : vector<1x1x16x32xbf16> to vector<16x32xbf16>
    %336 = arith.truncf %333 : vector<16x16xf32> to vector<16x16xbf16>
    %cst_212 = arith.constant dense<0.000000e+00> : vector<16x32xf32>
    %337 = tpu.matmul %336, %335, %cst_212 {dimension_numbers = #tpu.dot_dimension_numbers<[1], [0], [0], [1], [0, 0, 1, 1], [], []>} : vector<16x16xbf16>, vector<16x32xbf16>, vector<16x32xf32> -> vector<16x32xf32>
    %338 = arith.addf %262, %337 : vector<16x32xf32>
    %c1_213 = arith.constant 1 : index
    %c0_214 = arith.constant 0 : index
    %c1_215 = arith.constant 1 : index
    %c0_216 = arith.constant 0 : index
    %c0_217 = arith.constant 0 : index
    %339 = vector.load %arg4[%c1_213, %c0_214, %c1_215, %c0_216, %c0_217] : memref<2x3x2x32x16xbf16, #tpu.memory_space<vmem>>, vector<1x1x1x32x16xbf16>
    %340 = vector.shape_cast %339 : vector<1x1x1x32x16xbf16> to vector<32x16xbf16>
    %341 = arith.truncf %261 : vector<16x32xf32> to vector<16x32xbf16>
    %cst_218 = arith.constant dense<0.000000e+00> : vector<16x16xf32>
    %342 = tpu.matmul %341, %340, %cst_218 {dimension_numbers = #tpu.dot_dimension_numbers<[1], [0], [0], [1], [0, 0, 1, 1], [], []>} : vector<16x32xbf16>, vector<32x16xbf16>, vector<16x16xf32> -> vector<16x16xf32>
    %c1_219 = arith.constant 1 : index
    %c0_220 = arith.constant 0 : index
    %c1_221 = arith.constant 1 : index
    %c0_222 = arith.constant 0 : index
    %c0_223 = arith.constant 0 : index
    %343 = vector.load %arg5[%c1_219, %c0_220, %c1_221, %c0_222, %c0_223] : memref<2x3x2x1x16xf32, #tpu.memory_space<vmem>>, vector<1x1x1x1x16xf32>
    %344 = vector.shape_cast %343 : vector<1x1x1x1x16xf32> to vector<1x16xf32>
    %345 = vector.broadcast %344 : vector<1x16xf32> to vector<16x16xf32>
    %346 = arith.addf %342, %345 : vector<16x16xf32>
    %c1_224 = arith.constant 1 : index
    %c1_225 = arith.constant 1 : index
    %c1_226 = arith.constant 1 : index
    %c0_227 = arith.constant 0 : index
    %c0_228 = arith.constant 0 : index
    %347 = vector.load %arg4[%c1_224, %c1_225, %c1_226, %c0_227, %c0_228] : memref<2x3x2x32x16xbf16, #tpu.memory_space<vmem>>, vector<1x1x1x32x16xbf16>
    %348 = vector.shape_cast %347 : vector<1x1x1x32x16xbf16> to vector<32x16xbf16>
    %349 = arith.truncf %261 : vector<16x32xf32> to vector<16x32xbf16>
    %cst_229 = arith.constant dense<0.000000e+00> : vector<16x16xf32>
    %350 = tpu.matmul %349, %348, %cst_229 {dimension_numbers = #tpu.dot_dimension_numbers<[1], [0], [0], [1], [0, 0, 1, 1], [], []>} : vector<16x32xbf16>, vector<32x16xbf16>, vector<16x16xf32> -> vector<16x16xf32>
    %c1_230 = arith.constant 1 : index
    %c1_231 = arith.constant 1 : index
    %c1_232 = arith.constant 1 : index
    %c0_233 = arith.constant 0 : index
    %c0_234 = arith.constant 0 : index
    %351 = vector.load %arg5[%c1_230, %c1_231, %c1_232, %c0_233, %c0_234] : memref<2x3x2x1x16xf32, #tpu.memory_space<vmem>>, vector<1x1x1x1x16xf32>
    %352 = vector.shape_cast %351 : vector<1x1x1x1x16xf32> to vector<1x16xf32>
    %353 = vector.broadcast %352 : vector<1x16xf32> to vector<16x16xf32>
    %354 = arith.addf %350, %353 : vector<16x16xf32>
    %c1_235 = arith.constant 1 : index
    %c2_236 = arith.constant 2 : index
    %c1_237 = arith.constant 1 : index
    %c0_238 = arith.constant 0 : index
    %c0_239 = arith.constant 0 : index
    %355 = vector.load %arg4[%c1_235, %c2_236, %c1_237, %c0_238, %c0_239] : memref<2x3x2x32x16xbf16, #tpu.memory_space<vmem>>, vector<1x1x1x32x16xbf16>
    %356 = vector.shape_cast %355 : vector<1x1x1x32x16xbf16> to vector<32x16xbf16>
    %357 = arith.truncf %261 : vector<16x32xf32> to vector<16x32xbf16>
    %cst_240 = arith.constant dense<0.000000e+00> : vector<16x16xf32>
    %358 = tpu.matmul %357, %356, %cst_240 {dimension_numbers = #tpu.dot_dimension_numbers<[1], [0], [0], [1], [0, 0, 1, 1], [], []>} : vector<16x32xbf16>, vector<32x16xbf16>, vector<16x16xf32> -> vector<16x16xf32>
    %c1_241 = arith.constant 1 : index
    %c2_242 = arith.constant 2 : index
    %c1_243 = arith.constant 1 : index
    %c0_244 = arith.constant 0 : index
    %c0_245 = arith.constant 0 : index
    %359 = vector.load %arg5[%c1_241, %c2_242, %c1_243, %c0_244, %c0_245] : memref<2x3x2x1x16xf32, #tpu.memory_space<vmem>>, vector<1x1x1x1x16xf32>
    %360 = vector.shape_cast %359 : vector<1x1x1x1x16xf32> to vector<1x16xf32>
    %361 = vector.broadcast %360 : vector<1x16xf32> to vector<16x16xf32>
    %362 = arith.addf %358, %361 : vector<16x16xf32>
    %363 = vector.extract_strided_slice %346 {offsets = [0, 0], sizes = [8, 16], strides = [1, 1]} : vector<16x16xf32> to vector<8x16xf32>
    %364 = vector.extract_strided_slice %354 {offsets = [0, 0], sizes = [8, 16], strides = [1, 1]} : vector<16x16xf32> to vector<8x16xf32>
    %365 = vector.extract_strided_slice %362 {offsets = [0, 0], sizes = [8, 16], strides = [1, 1]} : vector<16x16xf32> to vector<8x16xf32>
    %366 = arith.truncf %363 : vector<8x16xf32> to vector<8x16xbf16>
    %367 = arith.truncf %364 : vector<8x16xf32> to vector<8x16xbf16>
    %cst_246 = arith.constant dense<0.000000e+00> : vector<8x8xf32>
    %368 = tpu.matmul %366, %367, %cst_246 {dimension_numbers = #tpu.dot_dimension_numbers<[1], [1], [0], [0], [0, 0, 1, 0], [], []>} : vector<8x16xbf16>, vector<8x16xbf16>, vector<8x8xf32> -> vector<8x8xf32>
    %c0_247 = arith.constant 0 : index
    %c0_248 = arith.constant 0 : index
    %c0_249 = arith.constant 0 : index
    %369 = vector.load %arg2[%c0_247, %c0_248, %c0_249] : memref<2x1x8xf32, #tpu.memory_space<vmem>>, vector<1x1x8xf32>
    %370 = vector.shape_cast %369 : vector<1x1x8xf32> to vector<1x8xf32>
    %371 = vector.broadcast %370 : vector<1x8xf32> to vector<8x8xf32>
    %372 = arith.addf %368, %371 : vector<8x8xf32>
    %cst_250 = arith.constant dense<0xFF800000> : vector<8xf32>
    %373 = vector.multi_reduction <maximumf>, %372, %cst_250 [1] : vector<8x8xf32> to vector<8xf32>
    %374 = vector.shape_cast %373 : vector<8xf32> to vector<8x1xf32>
    %375 = vector.broadcast %374 : vector<8x1xf32> to vector<8x8xf32>
    %376 = arith.subf %372, %375 : vector<8x8xf32>
    %377 = math.exp %376 : vector<8x8xf32>
    %cst_251 = arith.constant dense<0.000000e+00> : vector<8xf32>
    %378 = vector.multi_reduction <add>, %377, %cst_251 [1] : vector<8x8xf32> to vector<8xf32>
    %379 = vector.shape_cast %378 : vector<8xf32> to vector<8x1xf32>
    %380 = tpu.reciprocal %379 {approx = true} : vector<8x1xf32> -> vector<8x1xf32>
    %381 = vector.broadcast %380 : vector<8x1xf32> to vector<8x8xf32>
    %382 = arith.mulf %377, %381 : vector<8x8xf32>
    %383 = arith.truncf %382 : vector<8x8xf32> to vector<8x8xbf16>
    %384 = arith.truncf %365 : vector<8x16xf32> to vector<8x16xbf16>
    %cst_252 = arith.constant dense<0.000000e+00> : vector<8x16xf32>
    %385 = tpu.matmul %383, %384, %cst_252 {dimension_numbers = #tpu.dot_dimension_numbers<[1], [0], [0], [1], [0, 0, 1, 1], [], []>} : vector<8x8xbf16>, vector<8x16xbf16>, vector<8x16xf32> -> vector<8x16xf32>
    %386 = vector.extract_strided_slice %346 {offsets = [8, 0], sizes = [8, 16], strides = [1, 1]} : vector<16x16xf32> to vector<8x16xf32>
    %387 = vector.extract_strided_slice %354 {offsets = [8, 0], sizes = [8, 16], strides = [1, 1]} : vector<16x16xf32> to vector<8x16xf32>
    %388 = vector.extract_strided_slice %362 {offsets = [8, 0], sizes = [8, 16], strides = [1, 1]} : vector<16x16xf32> to vector<8x16xf32>
    %389 = arith.truncf %386 : vector<8x16xf32> to vector<8x16xbf16>
    %390 = arith.truncf %387 : vector<8x16xf32> to vector<8x16xbf16>
    %cst_253 = arith.constant dense<0.000000e+00> : vector<8x8xf32>
    %391 = tpu.matmul %389, %390, %cst_253 {dimension_numbers = #tpu.dot_dimension_numbers<[1], [1], [0], [0], [0, 0, 1, 0], [], []>} : vector<8x16xbf16>, vector<8x16xbf16>, vector<8x8xf32> -> vector<8x8xf32>
    %c1_254 = arith.constant 1 : index
    %c0_255 = arith.constant 0 : index
    %c0_256 = arith.constant 0 : index
    %392 = vector.load %arg2[%c1_254, %c0_255, %c0_256] : memref<2x1x8xf32, #tpu.memory_space<vmem>>, vector<1x1x8xf32>
    %393 = vector.shape_cast %392 : vector<1x1x8xf32> to vector<1x8xf32>
    %394 = vector.broadcast %393 : vector<1x8xf32> to vector<8x8xf32>
    %395 = arith.addf %391, %394 : vector<8x8xf32>
    %cst_257 = arith.constant dense<0xFF800000> : vector<8xf32>
    %396 = vector.multi_reduction <maximumf>, %395, %cst_257 [1] : vector<8x8xf32> to vector<8xf32>
    %397 = vector.shape_cast %396 : vector<8xf32> to vector<8x1xf32>
    %398 = vector.broadcast %397 : vector<8x1xf32> to vector<8x8xf32>
    %399 = arith.subf %395, %398 : vector<8x8xf32>
    %400 = math.exp %399 : vector<8x8xf32>
    %cst_258 = arith.constant dense<0.000000e+00> : vector<8xf32>
    %401 = vector.multi_reduction <add>, %400, %cst_258 [1] : vector<8x8xf32> to vector<8xf32>
    %402 = vector.shape_cast %401 : vector<8xf32> to vector<8x1xf32>
    %403 = tpu.reciprocal %402 {approx = true} : vector<8x1xf32> -> vector<8x1xf32>
    %404 = vector.broadcast %403 : vector<8x1xf32> to vector<8x8xf32>
    %405 = arith.mulf %400, %404 : vector<8x8xf32>
    %406 = arith.truncf %405 : vector<8x8xf32> to vector<8x8xbf16>
    %407 = arith.truncf %388 : vector<8x16xf32> to vector<8x16xbf16>
    %cst_259 = arith.constant dense<0.000000e+00> : vector<8x16xf32>
    %408 = tpu.matmul %406, %407, %cst_259 {dimension_numbers = #tpu.dot_dimension_numbers<[1], [0], [0], [1], [0, 0, 1, 1], [], []>} : vector<8x8xbf16>, vector<8x16xbf16>, vector<8x16xf32> -> vector<8x16xf32>
    %409 = tpu.concatenate %385, %408 in 0 : vector<8x16xf32>, vector<8x16xf32> -> vector<16x16xf32>
    %c1_260 = arith.constant 1 : index
    %c1_261 = arith.constant 1 : index
    %c0_262 = arith.constant 0 : index
    %c0_263 = arith.constant 0 : index
    %410 = vector.load %arg6[%c1_260, %c1_261, %c0_262, %c0_263] : memref<2x2x16x32xbf16, #tpu.memory_space<vmem>>, vector<1x1x16x32xbf16>
    %411 = vector.shape_cast %410 : vector<1x1x16x32xbf16> to vector<16x32xbf16>
    %412 = arith.truncf %409 : vector<16x16xf32> to vector<16x16xbf16>
    %cst_264 = arith.constant dense<0.000000e+00> : vector<16x32xf32>
    %413 = tpu.matmul %412, %411, %cst_264 {dimension_numbers = #tpu.dot_dimension_numbers<[1], [0], [0], [1], [0, 0, 1, 1], [], []>} : vector<16x16xbf16>, vector<16x32xbf16>, vector<16x32xf32> -> vector<16x32xf32>
    %414 = arith.addf %338, %413 : vector<16x32xf32>
    %c1_265 = arith.constant 1 : index
    %c0_266 = arith.constant 0 : index
    %c0_267 = arith.constant 0 : index
    %415 = vector.load %arg7[%c1_265, %c0_266, %c0_267] : memref<2x1x32xf32, #tpu.memory_space<vmem>>, vector<1x1x32xf32>
    %416 = vector.shape_cast %415 : vector<1x1x32xf32> to vector<1x32xf32>
    %417 = vector.broadcast %416 : vector<1x32xf32> to vector<16x32xf32>
    %418 = arith.addf %414, %417 : vector<16x32xf32>
    %419 = arith.addf %261, %418 : vector<16x32xf32>
    %c1_268 = arith.constant 1 : index
    %c0_269 = arith.constant 0 : index
    %c0_270 = arith.constant 0 : index
    %c0_271 = arith.constant 0 : index
    %420 = vector.load %arg8[%c1_268, %c0_269, %c0_270, %c0_271] : memref<2x2x1x32xf32, #tpu.memory_space<vmem>>, vector<1x1x1x32xf32>
    %421 = vector.shape_cast %420 : vector<1x1x1x32xf32> to vector<1x32xf32>
    %c1_272 = arith.constant 1 : index
    %c1_273 = arith.constant 1 : index
    %c0_274 = arith.constant 0 : index
    %c0_275 = arith.constant 0 : index
    %422 = vector.load %arg8[%c1_272, %c1_273, %c0_274, %c0_275] : memref<2x2x1x32xf32, #tpu.memory_space<vmem>>, vector<1x1x1x32xf32>
    %423 = vector.shape_cast %422 : vector<1x1x1x32xf32> to vector<1x32xf32>
    %cst_276 = arith.constant dense<0.000000e+00> : vector<16xf32>
    %424 = vector.multi_reduction <add>, %419, %cst_276 [1] : vector<16x32xf32> to vector<16xf32>
    %425 = vector.shape_cast %424 : vector<16xf32> to vector<16x1xf32>
    %cst_277 = arith.constant 3.200000e+01 : f32
    %426 = vector.broadcast %cst_277 : f32 to vector<16x1xf32>
    %427 = arith.divf %425, %426 : vector<16x1xf32>
    %428 = vector.broadcast %427 : vector<16x1xf32> to vector<16x32xf32>
    %429 = arith.subf %419, %428 : vector<16x32xf32>
    %430 = arith.mulf %429, %429 : vector<16x32xf32>
    %cst_278 = arith.constant dense<0.000000e+00> : vector<16xf32>
    %431 = vector.multi_reduction <add>, %430, %cst_278 [1] : vector<16x32xf32> to vector<16xf32>
    %432 = vector.shape_cast %431 : vector<16xf32> to vector<16x1xf32>
    %cst_279 = arith.constant 3.200000e+01 : f32
    %433 = vector.broadcast %cst_279 : f32 to vector<16x1xf32>
    %434 = arith.divf %432, %433 : vector<16x1xf32>
    %435 = vector.broadcast %427 : vector<16x1xf32> to vector<16x32xf32>
    %436 = arith.subf %419, %435 : vector<16x32xf32>
    %cst_280 = arith.constant 9.99999996E-13 : f32
    %437 = vector.broadcast %cst_280 : f32 to vector<16x1xf32>
    %438 = arith.addf %434, %437 : vector<16x1xf32>
    %439 = math.rsqrt %438 : vector<16x1xf32>
    %440 = vector.broadcast %439 : vector<16x1xf32> to vector<16x32xf32>
    %441 = arith.mulf %436, %440 : vector<16x32xf32>
    %442 = vector.broadcast %421 : vector<1x32xf32> to vector<16x32xf32>
    %443 = arith.mulf %441, %442 : vector<16x32xf32>
    %444 = vector.broadcast %423 : vector<1x32xf32> to vector<16x32xf32>
    %445 = arith.addf %443, %444 : vector<16x32xf32>
    %c1_281 = arith.constant 1 : index
    %c0_282 = arith.constant 0 : index
    %c0_283 = arith.constant 0 : index
    %446 = vector.load %arg9[%c1_281, %c0_282, %c0_283] : memref<2x32x64xbf16, #tpu.memory_space<vmem>>, vector<1x32x64xbf16>
    %447 = vector.shape_cast %446 : vector<1x32x64xbf16> to vector<32x64xbf16>
    %448 = arith.truncf %445 : vector<16x32xf32> to vector<16x32xbf16>
    %cst_284 = arith.constant dense<0.000000e+00> : vector<16x64xf32>
    %449 = tpu.matmul %448, %447, %cst_284 {dimension_numbers = #tpu.dot_dimension_numbers<[1], [0], [0], [1], [0, 0, 1, 1], [], []>} : vector<16x32xbf16>, vector<32x64xbf16>, vector<16x64xf32> -> vector<16x64xf32>
    %c1_285 = arith.constant 1 : index
    %c0_286 = arith.constant 0 : index
    %c0_287 = arith.constant 0 : index
    %450 = vector.load %arg10[%c1_285, %c0_286, %c0_287] : memref<2x1x64xf32, #tpu.memory_space<vmem>>, vector<1x1x64xf32>
    %451 = vector.shape_cast %450 : vector<1x1x64xf32> to vector<1x64xf32>
    %452 = vector.broadcast %451 : vector<1x64xf32> to vector<16x64xf32>
    %453 = arith.addf %449, %452 : vector<16x64xf32>
    %cst_288 = arith.constant 5.000000e-01 : f32
    %454 = vector.broadcast %cst_288 : f32 to vector<16x64xf32>
    %455 = arith.mulf %454, %453 : vector<16x64xf32>
    %cst_289 = arith.constant 0.707106769 : f32
    %456 = vector.broadcast %cst_289 : f32 to vector<16x64xf32>
    %457 = arith.mulf %453, %456 : vector<16x64xf32>
    %458 = math.erf %457 : vector<16x64xf32>
    %cst_290 = arith.constant 1.000000e+00 : f32
    %459 = vector.broadcast %cst_290 : f32 to vector<16x64xf32>
    %460 = arith.addf %459, %458 : vector<16x64xf32>
    %461 = arith.mulf %455, %460 : vector<16x64xf32>
    %c1_291 = arith.constant 1 : index
    %c0_292 = arith.constant 0 : index
    %c0_293 = arith.constant 0 : index
    %462 = vector.load %arg11[%c1_291, %c0_292, %c0_293] : memref<2x64x32xbf16, #tpu.memory_space<vmem>>, vector<1x64x32xbf16>
    %463 = vector.shape_cast %462 : vector<1x64x32xbf16> to vector<64x32xbf16>
    %464 = arith.truncf %461 : vector<16x64xf32> to vector<16x64xbf16>
    %cst_294 = arith.constant dense<0.000000e+00> : vector<16x32xf32>
    %465 = tpu.matmul %464, %463, %cst_294 {dimension_numbers = #tpu.dot_dimension_numbers<[1], [0], [0], [1], [0, 0, 1, 1], [], []>} : vector<16x64xbf16>, vector<64x32xbf16>, vector<16x32xf32> -> vector<16x32xf32>
    %c1_295 = arith.constant 1 : index
    %c0_296 = arith.constant 0 : index
    %c0_297 = arith.constant 0 : index
    %466 = vector.load %arg12[%c1_295, %c0_296, %c0_297] : memref<2x1x32xf32, #tpu.memory_space<vmem>>, vector<1x1x32xf32>
    %467 = vector.shape_cast %466 : vector<1x1x32xf32> to vector<1x32xf32>
    %468 = vector.broadcast %467 : vector<1x32xf32> to vector<16x32xf32>
    %469 = arith.addf %465, %468 : vector<16x32xf32>
    %470 = arith.addf %445, %469 : vector<16x32xf32>
    %c1_298 = arith.constant 1 : index
    %c0_299 = arith.constant 0 : index
    %c0_300 = arith.constant 0 : index
    %c0_301 = arith.constant 0 : index
    %471 = vector.load %arg13[%c1_298, %c0_299, %c0_300, %c0_301] : memref<2x2x1x32xf32, #tpu.memory_space<vmem>>, vector<1x1x1x32xf32>
    %472 = vector.shape_cast %471 : vector<1x1x1x32xf32> to vector<1x32xf32>
    %c1_302 = arith.constant 1 : index
    %c1_303 = arith.constant 1 : index
    %c0_304 = arith.constant 0 : index
    %c0_305 = arith.constant 0 : index
    %473 = vector.load %arg13[%c1_302, %c1_303, %c0_304, %c0_305] : memref<2x2x1x32xf32, #tpu.memory_space<vmem>>, vector<1x1x1x32xf32>
    %474 = vector.shape_cast %473 : vector<1x1x1x32xf32> to vector<1x32xf32>
    %cst_306 = arith.constant dense<0.000000e+00> : vector<16xf32>
    %475 = vector.multi_reduction <add>, %470, %cst_306 [1] : vector<16x32xf32> to vector<16xf32>
    %476 = vector.shape_cast %475 : vector<16xf32> to vector<16x1xf32>
    %cst_307 = arith.constant 3.200000e+01 : f32
    %477 = vector.broadcast %cst_307 : f32 to vector<16x1xf32>
    %478 = arith.divf %476, %477 : vector<16x1xf32>
    %479 = vector.broadcast %478 : vector<16x1xf32> to vector<16x32xf32>
    %480 = arith.subf %470, %479 : vector<16x32xf32>
    %481 = arith.mulf %480, %480 : vector<16x32xf32>
    %cst_308 = arith.constant dense<0.000000e+00> : vector<16xf32>
    %482 = vector.multi_reduction <add>, %481, %cst_308 [1] : vector<16x32xf32> to vector<16xf32>
    %483 = vector.shape_cast %482 : vector<16xf32> to vector<16x1xf32>
    %cst_309 = arith.constant 3.200000e+01 : f32
    %484 = vector.broadcast %cst_309 : f32 to vector<16x1xf32>
    %485 = arith.divf %483, %484 : vector<16x1xf32>
    %486 = vector.broadcast %478 : vector<16x1xf32> to vector<16x32xf32>
    %487 = arith.subf %470, %486 : vector<16x32xf32>
    %cst_310 = arith.constant 9.99999996E-13 : f32
    %488 = vector.broadcast %cst_310 : f32 to vector<16x1xf32>
    %489 = arith.addf %485, %488 : vector<16x1xf32>
    %490 = math.rsqrt %489 : vector<16x1xf32>
    %491 = vector.broadcast %490 : vector<16x1xf32> to vector<16x32xf32>
    %492 = arith.mulf %487, %491 : vector<16x32xf32>
    %493 = vector.broadcast %472 : vector<1x32xf32> to vector<16x32xf32>
    %494 = arith.mulf %492, %493 : vector<16x32xf32>
    %495 = vector.broadcast %474 : vector<1x32xf32> to vector<16x32xf32>
    %496 = arith.addf %494, %495 : vector<16x32xf32>
    %c0_311 = arith.constant 0 : index
    %c0_312 = arith.constant 0 : index
    %497 = vector.load %arg14[%c0_311, %c0_312] : memref<32x128xbf16, #tpu.memory_space<vmem>>, vector<32x128xbf16>
    %498 = arith.truncf %496 : vector<16x32xf32> to vector<16x32xbf16>
    %cst_313 = arith.constant dense<0.000000e+00> : vector<16x128xf32>
    %499 = tpu.matmul %498, %497, %cst_313 {dimension_numbers = #tpu.dot_dimension_numbers<[1], [0], [0], [1], [0, 0, 1, 1], [], []>} : vector<16x32xbf16>, vector<32x128xbf16>, vector<16x128xf32> -> vector<16x128xf32>
    %c0_314 = arith.constant 0 : index
    %c0_315 = arith.constant 0 : index
    %500 = vector.load %arg15[%c0_314, %c0_315] : memref<1x128xf32, #tpu.memory_space<vmem>>, vector<1x128xf32>
    %501 = vector.broadcast %500 : vector<1x128xf32> to vector<16x128xf32>
    %502 = arith.addf %499, %501 : vector<16x128xf32>
    %c0_316 = arith.constant 0 : index
    %c0_317 = arith.constant 0 : index
    %503 = vector.load %arg16[%c0_316, %c0_317] : memref<16x128xf32, #tpu.memory_space<vmem>>, vector<16x128xf32>
    tpu.vector_store %arg16[%c0_316, %c0_317], %502 {strides = array<i32>} : memref<16x128xf32, #tpu.memory_space<vmem>>, vector<16x128xf32>,
    return
  }
  func.func @transform_0(%arg0: i32) -> (i32, i32) {
    %c0_i32 = arith.constant 0 : i32
    %c0_i32_0 = arith.constant 0 : i32
    %c0_i32_1 = arith.constant 0 : i32
    return %c0_i32, %c0_i32_0 : i32, i32
  }
  func.func @transform_1(%arg0: i32) -> (i32, i32, i32) {
    %c0_i32 = arith.constant 0 : i32
    %c0_i32_0 = arith.constant 0 : i32
    %c0_i32_1 = arith.constant 0 : i32
    %c0_i32_2 = arith.constant 0 : i32
    return %c0_i32, %c0_i32_0, %c0_i32_1 : i32, i32, i32
  }
  func.func @transform_2(%arg0: i32) -> (i32, i32, i32) {
    %c0_i32 = arith.constant 0 : i32
    %c0_i32_0 = arith.constant 0 : i32
    %c0_i32_1 = arith.constant 0 : i32
    %c0_i32_2 = arith.constant 0 : i32
    return %c0_i32, %c0_i32_0, %c0_i32_1 : i32, i32, i32
  }
  func.func @transform_3(%arg0: i32) -> (i32, i32, i32, i32, i32) {
    %c0_i32 = arith.constant 0 : i32
    %c0_i32_0 = arith.constant 0 : i32
    %c0_i32_1 = arith.constant 0 : i32
    %c0_i32_2 = arith.constant 0 : i32
    %c0_i32_3 = arith.constant 0 : i32
    %c0_i32_4 = arith.constant 0 : i32
    return %c0_i32, %c0_i32_0, %c0_i32_1, %c0_i32_2, %c0_i32_3 : i32, i32, i32, i32, i32
  }
  func.func @transform_4(%arg0: i32) -> (i32, i32, i32, i32, i32) {
    %c0_i32 = arith.constant 0 : i32
    %c0_i32_0 = arith.constant 0 : i32
    %c0_i32_1 = arith.constant 0 : i32
    %c0_i32_2 = arith.constant 0 : i32
    %c0_i32_3 = arith.constant 0 : i32
    %c0_i32_4 = arith.constant 0 : i32
    return %c0_i32, %c0_i32_0, %c0_i32_1, %c0_i32_2, %c0_i32_3 : i32, i32, i32, i32, i32
  }
  func.func @transform_5(%arg0: i32) -> (i32, i32, i32, i32) {
    %c0_i32 = arith.constant 0 : i32
    %c0_i32_0 = arith.constant 0 : i32
    %c0_i32_1 = arith.constant 0 : i32
    %c0_i32_2 = arith.constant 0 : i32
    %c0_i32_3 = arith.constant 0 : i32
    return %c0_i32, %c0_i32_0, %c0_i32_1, %c0_i32_2 : i32, i32, i32, i32
  }
  func.func @transform_6(%arg0: i32) -> (i32, i32, i32) {
    %c0_i32 = arith.constant 0 : i32
    %c0_i32_0 = arith.constant 0 : i32
    %c0_i32_1 = arith.constant 0 : i32
    %c0_i32_2 = arith.constant 0 : i32
    return %c0_i32, %c0_i32_0, %c0_i32_1 : i32, i32, i32
  }
  func.func @transform_7(%arg0: i32) -> (i32, i32, i32, i32) {
    %c0_i32 = arith.constant 0 : i32
    %c0_i32_0 = arith.constant 0 : i32
    %c0_i32_1 = arith.constant 0 : i32
    %c0_i32_2 = arith.constant 0 : i32
    %c0_i32_3 = arith.constant 0 : i32
    return %c0_i32, %c0_i32_0, %c0_i32_1, %c0_i32_2 : i32, i32, i32, i32
  }
  func.func @transform_8(%arg0: i32) -> (i32, i32, i32) {
    %c0_i32 = arith.constant 0 : i32
    %c0_i32_0 = arith.constant 0 : i32
    %c0_i32_1 = arith.constant 0 : i32
    %c0_i32_2 = arith.constant 0 : i32
    return %c0_i32, %c0_i32_0, %c0_i32_1 : i32, i32, i32
  }
  func.func @transform_9(%arg0: i32) -> (i32, i32, i32) {
    %c0_i32 = arith.constant 0 : i32
    %c0_i32_0 = arith.constant 0 : i32
    %c0_i32_1 = arith.constant 0 : i32
    %c0_i32_2 = arith.constant 0 : i32
    return %c0_i32, %c0_i32_0, %c0_i32_1 : i32, i32, i32
  }
  func.func @transform_10(%arg0: i32) -> (i32, i32, i32) {
    %c0_i32 = arith.constant 0 : i32
    %c0_i32_0 = arith.constant 0 : i32
    %c0_i32_1 = arith.constant 0 : i32
    %c0_i32_2 = arith.constant 0 : i32
    return %c0_i32, %c0_i32_0, %c0_i32_1 : i32, i32, i32
  }
  func.func @transform_11(%arg0: i32) -> (i32, i32, i32) {
    %c0_i32 = arith.constant 0 : i32
    %c0_i32_0 = arith.constant 0 : i32
    %c0_i32_1 = arith.constant 0 : i32
    %c0_i32_2 = arith.constant 0 : i32
    return %c0_i32, %c0_i32_0, %c0_i32_1 : i32, i32, i32
  }
  func.func @transform_12(%arg0: i32) -> (i32, i32, i32, i32) {
    %c0_i32 = arith.constant 0 : i32
    %c0_i32_0 = arith.constant 0 : i32
    %c0_i32_1 = arith.constant 0 : i32
    %c0_i32_2 = arith.constant 0 : i32
    %c0_i32_3 = arith.constant 0 : i32
    return %c0_i32, %c0_i32_0, %c0_i32_1, %c0_i32_2 : i32, i32, i32, i32
  }
  func.func @transform_13(%arg0: i32) -> (i32, i32) {
    %c0_i32 = arith.constant 0 : i32
    %c0_i32_0 = arith.constant 0 : i32
    %c0_i32_1 = arith.constant 0 : i32
    return %c0_i32, %c0_i32_0 : i32, i32
  }
  func.func @transform_14(%arg0: i32) -> (i32, i32) {
    %c0_i32 = arith.constant 0 : i32
    %c0_i32_0 = arith.constant 0 : i32
    %c0_i32_1 = arith.constant 0 : i32
    return %c0_i32, %c0_i32_0 : i32, i32
  }
  func.func @transform_15(%arg0: i32) -> (i32, i32) {
    %c0_i32 = arith.constant 0 : i32
    %c0_i32_0 = arith.constant 0 : i32
    %c0_i32_1 = arith.constant 0 : i32
    return %c0_i32, %c0_i32_0 : i32, i32
  }
}

</mosaic_0001>

<bundles_post_ra>
// kernel: tpu_custom_call.1
= control target key start
LH: loop header
LB: loop body
LE: loop exit
PB: predicated region body
PF: predicated region fallthrough
CT: control target
= control target key end

     0   :  { %vm57_vm0 = vcmask 261120   ;;  %s2757_s0 = inlined_call_operand.vmem [shape: f32[16,32], index: 0, kind: input, shape index: {}]   ;;  %s2758_s1 = inlined_call_operand.vmem [shape: f32[2,1,8], index: 1, kind: input, shape index: {}]   ;;  %s2759_s2 = inlined_call_operand.vmem [shape: f32[2,1,32], index: 2, kind: input, shape index: {}]   ;;  %s2760_s3 = inlined_call_operand.vmem [shape: bf16[2,3,2,32,16], index: 3, kind: input, shape index: {}]   ;;  %s2761_s4 = inlined_call_operand.vmem [shape: f32[2,3,2,1,16], index: 4, kind: input, shape index: {}]   ;;  %s2762_s5 = inlined_call_operand.vmem [shape: bf16[2,2,16,32], index: 5, kind: input, shape index: {}]   ;;  %s2763_s6 = inlined_call_operand.vmem [shape: f32[2,1,32], index: 6, kind: input, shape index: {}]   ;;  %s2764_s7 = inlined_call_operand.vmem [shape: f32[2,2,1,32], index: 7, kind: input, shape index: {}]   ;;  %s2765_s8 = inlined_call_operand.vmem [shape: bf16[2,32,64], index: 8, kind: input, shape index: {}]   ;;  %s2766_s9 = inlined_call_operand.vmem [shape: f32[2,1,64], index: 9, kind: input, shape index: {}]   ;;  %s2767_s10 = inlined_call_operand.vmem [shape: bf16[2,64,32], index: 10, kind: input, shape index: {}]   ;;  %s2768_s11 = inlined_call_operand.vmem [shape: f32[2,1,32], index: 11, kind: input, shape index: {}]   ;;  %s2769_s12 = inlined_call_operand.vmem [shape: f32[2,2,1,32], index: 12, kind: input, shape index: {}]   ;;  %s2770_s13 = inlined_call_operand.vmem [shape: bf16[32,128], index: 13, kind: input, shape index: {}]   ;;  %s2771_s14 = inlined_call_operand.vmem [shape: f32[1,128], index: 14, kind: input, shape index: {}]   ;;  %s2772_s15 = inlined_call_operand.hbm [shape: f32[16,128], index: 15, kind: output, shape index: {}]  }
   0x1   :  { %v52_v0 = vld [vmem:[%s2757_s0] sm:$0xff]  ;;  %v53_v1 = vld [vmem:[%s2757_s0 + $0x8] sm:$0xff] }
   0x2   :  { %v58_v2 = vsel %vm57_vm0, %v52_v0, 0.0  ;;  %v61_v3 = vsel %vm57_vm0, %v53_v1, 0.0 }
   0x3   :  { %59 = vadd.xlane.f32.xlu0 %v58_v2 }
   0xb   :  { %62 = vadd.xlane.f32.xlu0 %v61_v3 }
   0xc   :  { %20 = vsyncpa [#allocation3], 0  ;;  %v2232_v4 = vmov 32.0   ;;  %v2068_v21 = vld [vmem:[%s2760_s3 + $0x8] sm:$0xff]  ;;  %v2067_v26 = vld [vmem:[%s2760_s3] sm:$0xff]  ;;  %vm235_vm8 = vcmask 130048  }
   0xd   :  { %2144 = vrcp.f32 %v2232_v4  ;;  %v2070_v22 = vld [vmem:[%s2760_s3 + $0x28] sm:$0xff]  ;;  %149 = vmatpush.bf16.msra.mxu0 %v2068_v21  ;;  %v2069_v27 = vld [vmem:[%s2760_s3 + $0x20] sm:$0xff]  ;;  %v2075_v62 = vld [vmem:[%s2760_s3 + $0x18] sm:$0xff]  ;;  %vm272_vm9 = vcmask 1043456   ;;  %vm255_vm10 = vcmask 64512   ;;  %s2233_s28 = smov [#allocation2]  }
   0xe   :  { %v2072_v23 = vld [vmem:[%s2760_s3 + $0x48] sm:$0xff]  ;;  %185 = vmatpush.bf16.msra.mxu1 %v2070_v22  ;;  %v2071_v28 = vld [vmem:[%s2760_s3 + $0x40] sm:$0xff]  ;;  %v2074_v3 = vld [vmem:[%s2760_s3 + $0x10] sm:$0xff]  ;;  %s1760_s29 = sshll.u32 %s2233_s28, 4  ;;  %s2234_s16 = smov 128   ;;  %s1761_s29 = int_to_ptr.vmem [resolvable:$true] %s1760_s29 }
   0xf   :  { %221 = vmatpush.bf16.msra.mxu2 %v2072_v23  ;;  %v2113_v45 = vld [vmem:[%s2759_s2] ss:$0 sm:$0xff]  ;;  %v2114_v49 = vld [vmem:[%s2759_s2 + $0x1] ss:$0 sm:$0xff]  ;;  %v2116_v56 = vld [vmem:[%s2761_s4 + $0x2] ss:$0 sm:$0xff] }
  0x10   :  { %v2115_v60 = vld [vmem:[%s2761_s4] ss:$0 sm:$0xff]  ;;  %v2117_v63 = vld [vmem:[%s2761_s4 + $0x4] ss:$0 sm:$0xff]  ;;  %v2409_v23 = vld [vmem:[%s2758_s1 + $0x1] ss:$0 sm:$0xff] }
  0x11   :  { %150 = vmatpush.bf16.msra.mxu0 %v2067_v26  ;;  %v2404_v22 = vld [vmem:[%s2758_s1] ss:$0 sm:$0xff]  ;;  %s2235_s17 = smov 8  }
  0x12   :  { %186 = vmatpush.bf16.msra.mxu1 %v2069_v27 }
  0x13   :  { %v2145_v5 = vpop.eup %2144  ;;  %222 = vmatpush.bf16.msra.mxu2 %v2071_v28 }
  0x14   :  { %v65_v6 = vmul.f32 32.0, %v2145_v5  ;;  %vm69_vm1 = vweird.f32 %v2145_v5 }
  0x16   :  { %v66_v7 = vsub.f32 1.0, %v65_v6 }
  0x18   :  { %v67_v8 = vmul.f32 %v2145_v5, %v66_v7 }
  0x1a   :  { %v68_v9 = vadd.f32 %v2145_v5, %v67_v8 }
  0x1c   :  { %v2324_v10 = vsel %vm69_vm1, %v2145_v5, %v68_v9 }
  0x76   :  { %v60_v11 = vpop.xlane.xlu0 %59 }
  0x77   :  { %v71_v12 = vmul.f32 %v2324_v10, %v60_v11  ;;  %v2079_v11 = vld [vmem:[%s2760_s3 + $0x58] sm:$0xff] }
  0x79   :  { %v73_v13 = vsub.f32 %v52_v0, %v71_v12 }
  0x7b   :  { %v75_v14 = vmul.f32 %v73_v13, %v73_v13 }
  0x7d   :  { %v77_v15 = vsel %vm57_vm0, %v75_v14, 0.0 }
  0x7e   :  { %78 = vadd.xlane.f32.xlu1 %v77_v15  ;;  %v63_v16 = vpop.xlane.xlu0 %62 }
  0x7f   :  { %v72_v17 = vmul.f32 %v2324_v10, %v63_v16 }
  0x81   :  { %v74_v18 = vsub.f32 %v53_v1, %v72_v17  ;;  %v2078_v17 = vld [vmem:[%s2760_s3 + $0x50] sm:$0xff] }
  0x83   :  { %v76_v19 = vmul.f32 %v74_v18, %v74_v18 }
  0x85   :  { %v80_v20 = vsel %vm57_vm0, %v76_v19, 0.0 }
  0x86   :  { %81 = vadd.xlane.f32.xlu1 %v80_v20 }
  0xf1   :  { %v79_v24 = vpop.xlane.xlu1 %78 }
  0xf2   :  { %v83_v25 = vmul.f32 %v79_v24, %v2324_v10 }
  0xf4   :  { %v85_v29 = vadd.f32 1e-12, %v83_v25 }
  0xf6   :  { %2146 = vrsqrt.f32 %v85_v29  ;;  %vm93_vm3 = vweird.f32 %v85_v29 }
  0xf9   :  { %v82_v30 = vpop.xlane.xlu1 %81 }
  0xfa   :  { %v84_v31 = vmul.f32 %v82_v30, %v2324_v10 }
  0xfc   :  { %v2147_v32 = vpop.eup %2146  ;;  %v86_v33 = vadd.f32 1e-12, %v84_v31 }
  0xfd   :  { %v88_v34 = vmul.f32 %v2147_v32, %v85_v29  ;;  %vm94_vm2 = vweird.f32 %v2147_v32 }
  0xfe   :  { %2148 = vrsqrt.f32 %v86_v33  ;;  %vm95_vm4 = vmor %vm93_vm3, %vm94_vm2  ;;  %vm103_vm6 = vweird.f32 %v86_v33 }
  0xff   :  { %v89_v35 = vmul.f32 %v2147_v32, %v88_v34 }
 0x101   :  { %v90_v36 = vmul.f32 0.5, %v89_v35 }
 0x103   :  { %v91_v37 = vsub.f32 1.5, %v90_v36 }
 0x104   :  { %v2149_v38 = vpop.eup %2148 }
 0x105   :  { %v92_v39 = vmul.f32 %v2147_v32, %v91_v37  ;;  %v98_v40 = vmul.f32 %v2149_v38, %v86_v33  ;;  %vm104_vm5 = vweird.f32 %v2149_v38 }
 0x106   :  { %vm105_vm7 = vmor %vm103_vm6, %vm104_vm5 }
 0x107   :  { %v99_v41 = vmul.f32 %v2149_v38, %v98_v40  ;;  %v96_v42 = vsel %vm95_vm4, %v2147_v32, %v92_v39  ;;  %v2121_v32 = vld [vmem:[%s2761_s4 + $0x5] ss:$0 sm:$0xff] }
 0x108   :  { %v107_v46 = vmul.f32 %v96_v42, %v73_v13 }
 0x109   :  { %v100_v43 = vmul.f32 0.5, %v99_v41 }
 0x10a   :  { %v112_v50 = vmul.f32 %v2113_v45, %v107_v46 }
 0x10b   :  { %v101_v44 = vsub.f32 1.5, %v100_v43 }
 0x10c   :  { %v2356_v53 = vadd.f32 %v2114_v49, %v112_v50 }
 0x10d   :  { %v102_v47 = vmul.f32 %v2149_v38, %v101_v44 }
 0x10f   :  { %v106_v48 = vsel %vm105_vm7, %v2149_v38, %v102_v47 }
 0x110   :  { %v108_v51 = vmul.f32 %v106_v48, %v74_v18 }
 0x112   :  { %v113_v52 = vmul.f32 %v2113_v45, %v108_v51  ;;  %v2077_v51 = vld [vmem:[%s2760_s3 + $0x38] sm:$0xff] }
 0x114   :  { %v2358_v54 = vadd.f32 %v2114_v49, %v113_v52  ;;  %v2076_v52 = vld [vmem:[%s2760_s3 + $0x30] sm:$0xff] }
 0x116   :  { %v2362_v55 = vpack.c.bf16 %v2358_v54, %v2356_v53 }
 0x118   :  { %1783 = vmatmul.msk.bf16.vlgmr.msra.gmra.mxu0 %vm57_vm0, %v2362_v55  ;;  %1797 = vmatmul.msk.bf16.vlgmr.msra.gmra.mxu1 %vm57_vm0, %v2362_v55 }
 0x119   :  { %1811 = vmatmul.msk.bf16.vlgmr.msra.gmra.mxu2 %vm57_vm0, %v2362_v55 }
 0x195   :  { %v188_v57 = vpop.f32.mrf.mxu1  ;;  %v152_v59 = vpop.f32.mrf.mxu0 }
 0x196   :  { %v189_v58 = vadd.f32 %v2116_v56, %v188_v57  ;;  %v153_v1 = vadd.f32 %v2115_v60, %v152_v59 }
 0x198   :  { %v230_v61 = vpack.c.bf16 %v189_v58, %v189_v58  ;;  %v229_v8 = vpack.c.bf16 %v153_v1, %v153_v1 }
 0x19a   :  { %v240_v0 = vsel %vm235_vm8, %v230_v61, 0 }
 0x19b   :  { %249 = vmatpush.bf16.xpose.msra.mxu3 %v240_v0 }
 0x19c   :  { %v224_v2 = vpop.f32.mrf.mxu2 }
 0x19d   :  { %v225_v4 = vadd.f32 %v2117_v63, %v224_v2  ;;  %v190_v5 = vpop.f32.mrf.mxu1  ;;  %v154_v12 = vpop.f32.mrf.mxu0 }
 0x19e   :  { %v191_v6 = vadd.f32 %v2116_v56, %v190_v5  ;;  %v155_v15 = vadd.f32 %v2115_v60, %v154_v12 }
 0x19f   :  { %v268_v7 = vpack.c.bf16 %v225_v4, %v225_v4  ;;  %v2122_v4 = vld [vmem:[%s2761_s4 + $0x3] ss:$0 sm:$0xff] }
 0x1a0   :  { %v290_v9 = vpack.c.bf16 %v191_v6, %v191_v6  ;;  %v289_v20 = vpack.c.bf16 %v155_v15, %v155_v15 }
 0x1a1   :  { %v274_v13 = vsel %vm272_vm9, %v268_v7, 0 }
 0x1a2   :  { %283 = vmatpush.bf16.msrb.mxu0 %v274_v13  ;;  %1812 = vmatmul.msk.bf16.vlgmr.msra.gmra.mxu3 %vm235_vm8, %v229_v8  ;;  %v300_v14 = vsel %vm235_vm8, %v290_v9, 0  ;;  %v2120_v9 = vld [vmem:[%s2761_s4 + $0x1] ss:$0 sm:$0xff] }
 0x1a3   :  { %378 = vmatpush.bf16.msrb.mxu3 %v2075_v62  ;;  %309 = vmatpush.bf16.xpose.msrb.mxu1 %v300_v14 }
 0x1a4   :  { %v226_v16 = vpop.f32.mrf.mxu2 }
 0x1a5   :  { %v227_v18 = vadd.f32 %v2117_v63, %v226_v16 }
 0x1a6   :  { %414 = vmatpush.bf16.msra.mxu0 %v2077_v51 }
 0x1a7   :  { %379 = vmatpush.bf16.msrb.mxu3 %v2074_v3  ;;  %v327_v19 = vpack.c.bf16 %v227_v18, %v227_v18 }
 0x1a9   :  { %v332_v21 = vsel %vm272_vm9, %v327_v19, 0 }
 0x1aa   :  { %341 = vmatpush.bf16.msrb.mxu2 %v332_v21  ;;  %1815 = vmatmul.msk.bf16.vlgmr.msrb.gmra.mxu1 %vm235_vm8, %v289_v20 }
 0x1ab   :  { %450 = vmatpush.bf16.msra.mxu1 %v2079_v11  ;;  %415 = vmatpush.bf16.msra.mxu0 %v2076_v52 }
 0x1af   :  { %451 = vmatpush.bf16.msra.mxu1 %v2078_v17 }
 0x1b2   :  { %1830 = vmatmul.msk.bf16.vlgmr.msrb.gmra.mxu3 %vm57_vm0, %v2362_v55 }
 0x1ba   :  { %1858 = vmatmul.msk.bf16.vlgmr.msra.gmra.mxu1 %vm57_vm0, %v2362_v55 }
 0x225   :  { %v251_v24 = vpop.f32.mrf.mxu3 }
 0x226   :  { %v252_v25 = vadd.f32 %v2404_v22, %v251_v24 }
 0x227   :  { %v311_v26 = vpop.f32.mrf.mxu1 }
 0x228   :  { %v312_v27 = vadd.f32 %v2409_v23, %v311_v26  ;;  %v256_v28 = vsel %vm255_vm10, %v252_v25, -inf }
 0x229   :  { %257 = vmax.xlane.f32.xlu2 %v256_v28 }
 0x22a   :  { %v315_v29 = vsel %vm255_vm10, %v312_v27, -inf }
 0x22b   :  { %316 = vmax.xlane.f32.xlu0 %v315_v29 }
 0x22d   :  { %v253_v30 = vpop.f32.mrf.mxu3 }
 0x22f   :  { %v313_v31 = vpop.f32.mrf.mxu1 }
 0x235   :  { %v381_v8 = vpop.f32.mrf.mxu3 }
 0x236   :  { %v382_v12 = vadd.f32 %v2120_v9, %v381_v8 }
 0x237   :  { %v453_v33 = vpop.f32.mrf.mxu1 }
 0x238   :  { %v454_v34 = vadd.f32 %v2121_v32, %v453_v33  ;;  %v458_v15 = vpack.c.bf16 %v382_v12, %v382_v12 }
 0x23a   :  { %v491_v35 = vpack.c.bf16 %v454_v34, %v454_v34 }
 0x23c   :  { %v496_v36 = vsel %vm272_vm9, %v491_v35, 0 }
 0x23d   :  { %505 = vmatpush.bf16.msra.mxu3 %v496_v36  ;;  %v383_v17 = vpop.f32.mrf.mxu3 }
 0x23e   :  { %v384_v19 = vadd.f32 %v2120_v9, %v383_v17 }
 0x23f   :  { %v455_v37 = vpop.f32.mrf.mxu1 }
 0x240   :  { %v456_v38 = vadd.f32 %v2121_v32, %v455_v37  ;;  %v511_v20 = vpack.c.bf16 %v384_v19, %v384_v19 }
 0x242   :  { %v544_v39 = vpack.c.bf16 %v456_v38, %v456_v38 }
 0x244   :  { %v549_v40 = vsel %vm272_vm9, %v544_v39, 0 }
 0x245   :  { %558 = vmatpush.bf16.msrb.mxu1 %v549_v40 }
 0x29c   :  { %v258_v41 = vpop.xlane.xlu2 %257 }
 0x29d   :  { %v259_v42 = vsub.f32 %v252_v25, %v258_v41  ;;  %v2073_v41 = vld [vmem:[%s2762_s5] sm:$0xff] }
 0x29e   :  { %v317_v43 = vpop.xlane.xlu0 %316  ;;  %607 = vmatpush.bf16.msrb.mxu3 %v2073_v41 }
 0x29f   :  { %v260_v44 = vmul.f32 1.442695, %v259_v42  ;;  %v318_v45 = vsub.f32 %v312_v27, %v317_v43 }
 0x2a1   :  { %2150 = vpow2.f32 %v260_v44  ;;  %v319_v46 = vmul.f32 1.442695, %v318_v45 }
 0x2a3   :  { %2152 = vpow2.f32 %v319_v46 }
 0x2a7   :  { %v2151_v47 = vpop.eup %2150 }
 0x2a8   :  { %v262_v48 = vsel %vm255_vm10, %v2151_v47, 0.0 }
 0x2a9   :  { %v2153_v49 = vpop.eup %2152  ;;  %263 = vadd.xlane.f32.xlu2 %v262_v48 }
 0x2aa   :  { %v321_v50 = vsel %vm255_vm10, %v2153_v49, 0.0 }
 0x2ab   :  { %322 = vadd.xlane.f32.xlu1 %v321_v50  ;;  %v2080_v50 = vld [vmem:[%s2762_s5 + $0x8] sm:$0xff] }
 0x31c   :  { %v264_v56 = vpop.xlane.xlu2 %263 }
 0x31d   :  { %2154 = vrcp.f32 %v264_v56 }
 0x31e   :  { %v323_v57 = vpop.xlane.xlu1 %322 }
 0x31f   :  { %2156 = vrcp.f32 %v323_v57 }
 0x323   :  { %v2155_v58 = vpop.eup %2154 }
 0x324   :  { %v266_v59 = vmul.f32 %v2155_v58, %v2151_v47 }
 0x325   :  { %v2157_v60 = vpop.eup %2156 }
 0x326   :  { %v325_v61 = vmul.f32 %v2157_v60, %v2153_v49  ;;  %v267_v62 = vpack.c.bf16 %v266_v59, %v266_v59  ;;  %v2123_v60 = vld [vmem:[%s2763_s6] ss:$0 sm:$0xff] }
 0x328   :  { %1813 = vmatmul.msk.bf16.vlgmr.msrb.gmra.mxu0 %vm255_vm10, %v267_v62  ;;  %v326_v63 = vpack.c.bf16 %v325_v61, %v325_v61 }
 0x32a   :  { %1816 = vmatmul.msk.bf16.vlgmr.msrb.gmra.mxu2 %vm255_vm10, %v326_v63 }
 0x338   :  { %1844 = vmatmul.msk.bf16.vlgmr.msra.gmra.mxu0 %vm57_vm0, %v2362_v55 }
 0x3a5   :  { %v2432_v0 = vpop.f32.mrf.mxu0 }
 0x3ad   :  { %v287_v1 = vpop.f32.mrf.mxu0  ;;  %v343_v2 = vpop.f32.mrf.mxu2 }
 0x3ae   :  { %v349_v3 = vpack.c.bf16 %v343_v2, %v2432_v0 }
 0x3b5   :  { %v345_v5 = vpop.f32.mrf.mxu2  ;;  %v417_v6 = vpop.f32.mrf.mxu0 }
 0x3b6   :  { %v418_v7 = vadd.f32 %v2122_v4, %v417_v6 }
 0x3b8   :  { %v459_v11 = vpack.c.bf16 %v418_v7, %v418_v7 }
 0x3ba   :  { %v464_v55 = vsel %vm235_vm8, %v459_v11, 0 }
 0x3bb   :  { %473 = vmatpush.bf16.xpose.msra.mxu2 %v464_v55 }
 0x3bd   :  { %v419_v13 = vpop.f32.mrf.mxu0 }
 0x3be   :  { %v420_v14 = vadd.f32 %v2122_v4, %v419_v13 }
 0x3c0   :  { %v512_v16 = vpack.c.bf16 %v420_v14, %v420_v14 }
 0x3c2   :  { %v517_v18 = vsel %vm235_vm8, %v512_v16, 0  ;;  %1859 = vmatmul.msk.bf16.vlgmr.msra.gmra.mxu2 %vm235_vm8, %v458_v15 }
 0x3c3   :  { %526 = vmatpush.bf16.xpose.msrb.mxu0 %v517_v18  ;;  %584 = vmatpush.bf16.msrb.mxu2 %v2080_v50 }
 0x3ca   :  { %1861 = vmatmul.msk.bf16.vlgmr.msrb.gmra.mxu0 %vm235_vm8, %v511_v20  ;;  %v2081_v20 = vld [vmem:[%s2765_s8] sm:$0xff] }
 0x445   :  { %v475_v21 = vpop.f32.mrf.mxu2 }
 0x446   :  { %v476_v24 = vadd.f32 %v2404_v22, %v475_v21 }
 0x447   :  { %v528_v25 = vpop.f32.mrf.mxu0 }
 0x448   :  { %v529_v26 = vadd.f32 %v2409_v23, %v528_v25  ;;  %v479_v27 = vsel %vm255_vm10, %v476_v24, -inf }
 0x449   :  { %480 = vmax.xlane.f32.xlu2 %v479_v27 }
 0x44a   :  { %v532_v28 = vsel %vm255_vm10, %v529_v26, -inf }
 0x44b   :  { %533 = vmax.xlane.f32.xlu0 %v532_v28 }
 0x44d   :  { %v477_v29 = vpop.f32.mrf.mxu2 }
 0x44f   :  { %v530_v30 = vpop.f32.mrf.mxu0 }
 0x4bc   :  { %v481_v31 = vpop.xlane.xlu2 %480 }
 0x4bd   :  { %v482_v32 = vsub.f32 %v476_v24, %v481_v31 }
 0x4be   :  { %v534_v33 = vpop.xlane.xlu0 %533 }
 0x4bf   :  { %v483_v34 = vmul.f32 1.442695, %v482_v32  ;;  %v535_v35 = vsub.f32 %v529_v26, %v534_v33 }
 0x4c1   :  { %2158 = vpow2.f32 %v483_v34  ;;  %v536_v36 = vmul.f32 1.442695, %v535_v35 }
 0x4c3   :  { %2160 = vpow2.f32 %v536_v36 }
 0x4c7   :  { %v2159_v37 = vpop.eup %2158 }
 0x4c8   :  { %v485_v38 = vsel %vm255_vm10, %v2159_v37, 0.0 }
 0x4c9   :  { %v2161_v39 = vpop.eup %2160  ;;  %486 = vadd.xlane.f32.xlu1 %v485_v38  ;;  %v2124_v38 = vld [vmem:[%s2764_s7] ss:$0 sm:$0xff] }
 0x4ca   :  { %v538_v40 = vsel %vm255_vm10, %v2161_v39, 0.0 }
 0x4cb   :  { %539 = vadd.xlane.f32.xlu2 %v538_v40 }
 0x53c   :  { %v487_v42 = vpop.xlane.xlu1 %486 }
 0x53d   :  { %2162 = vrcp.f32 %v487_v42  ;;  %v2125_v42 = vld [vmem:[%s2764_s7 + $0x1] ss:$0 sm:$0xff] }
 0x53e   :  { %v540_v43 = vpop.xlane.xlu2 %539 }
 0x53f   :  { %2164 = vrcp.f32 %v540_v43 }
 0x543   :  { %v2163_v44 = vpop.eup %2162 }
 0x544   :  { %v489_v45 = vmul.f32 %v2163_v44, %v2159_v37 }
 0x545   :  { %v2165_v46 = vpop.eup %2164 }
 0x546   :  { %v490_v47 = vpack.c.bf16 %v489_v45, %v489_v45  ;;  %v542_v48 = vmul.f32 %v2165_v46, %v2161_v39 }
 0x548   :  { %v543_v49 = vpack.c.bf16 %v542_v48, %v542_v48  ;;  %1860 = vmatmul.msk.bf16.vlgmr.msra.gmra.mxu3 %vm255_vm10, %v490_v47 }
 0x54a   :  { %1862 = vmatmul.msk.bf16.vlgmr.msrb.gmra.mxu1 %vm255_vm10, %v543_v49  ;;  %v2126_v49 = vld [vmem:[%s2766_s9] ss:$0 sm:$0xff] }
 0x558   :  { %1874 = vmatmul.msk.bf16.vlgmr.msrb.gmra.mxu3 %vm235_vm8, %v349_v3 }
 0x5c7   :  { %v560_v51 = vpop.f32.mrf.mxu1 }
 0x5cb   :  { %v507_v52 = vpop.f32.mrf.mxu3 }
 0x5cc   :  { %v567_v56 = vpack.c.bf16 %v560_v51, %v507_v52 }
 0x5ce   :  { %1869 = vmatmul.msk.bf16.vlgmr.msrb.gmra.mxu2 %vm235_vm8, %v567_v56 }
 0x5cf   :  { %v562_v57 = vpop.f32.mrf.mxu1 }
 0x5d3   :  { %v509_v58 = vpop.f32.mrf.mxu3 }
 0x5db   :  { %v609_v59 = vpop.f32.mrf.mxu3 }
 0x5e3   :  { %v611_v2 = vpop.f32.mrf.mxu3 }
 0x651   :  { %v586_v61 = vpop.f32.mrf.mxu2 }
 0x652   :  { %v610_v62 = vadd.f32 %v609_v59, %v586_v61 }
 0x654   :  { %v618_v63 = vadd.f32 %v2123_v60, %v610_v62 }
 0x656   :  { %v620_v0 = vadd.f32 %v618_v63, %v2356_v53 }
 0x658   :  { %v625_v1 = vsel %vm57_vm0, %v620_v0, 0.0 }
 0x659   :  { %626 = vadd.xlane.f32.xlu0 %v625_v1  ;;  %v588_v3 = vpop.f32.mrf.mxu2 }
 0x65a   :  { %v612_v4 = vadd.f32 %v611_v2, %v588_v3 }
 0x65c   :  { %v619_v5 = vadd.f32 %v2123_v60, %v612_v4 }
 0x65e   :  { %v621_v6 = vadd.f32 %v619_v5, %v2358_v54  ;;  %v2082_v54 = vld [vmem:[%s2765_s8 + $0x8] sm:$0xff] }
 0x65f   :  { %709 = vmatpush.bf16.msra.mxu0 %v2082_v54 }
 0x660   :  { %v628_v7 = vsel %vm57_vm0, %v621_v6, 0.0 }
 0x661   :  { %629 = vadd.xlane.f32.xlu1 %v628_v7  ;;  %v2086_v7 = vld [vmem:[%s2767_s10 + $0x18] sm:$0xff] }
 0x662   :  { %850 = vmatpush.bf16.msra.mxu1 %v2086_v7 }
 0x663   :  { %710 = vmatpush.bf16.msra.mxu0 %v2081_v20 }
 0x6cc   :  { %v627_v8 = vpop.xlane.xlu0 %626 }
 0x6cd   :  { %v631_v9 = vmul.f32 %v627_v8, %v2324_v10 }
 0x6cf   :  { %v633_v11 = vsub.f32 %v620_v0, %v631_v9 }
 0x6d1   :  { %v635_v55 = vmul.f32 %v633_v11, %v633_v11 }
 0x6d3   :  { %v637_v12 = vsel %vm57_vm0, %v635_v55, 0.0 }
 0x6d4   :  { %638 = vadd.xlane.f32.xlu2 %v637_v12  ;;  %v630_v53 = vpop.xlane.xlu1 %629 }
 0x6d5   :  { %v632_v13 = vmul.f32 %v630_v53, %v2324_v10 }
 0x6d7   :  { %v634_v14 = vsub.f32 %v621_v6, %v632_v13 }
 0x6d9   :  { %v636_v15 = vmul.f32 %v634_v14, %v634_v14 }
 0x6db   :  { %v640_v16 = vsel %vm57_vm0, %v636_v15, 0.0 }
 0x6dc   :  { %641 = vadd.xlane.f32.xlu0 %v640_v16 }
 0x747   :  { %v639_v17 = vpop.xlane.xlu2 %638 }
 0x748   :  { %v643_v18 = vmul.f32 %v639_v17, %v2324_v10 }
 0x74a   :  { %v645_v19 = vadd.f32 1e-12, %v643_v18 }
 0x74c   :  { %2166 = vrsqrt.f32 %v645_v19  ;;  %vm653_vm12 = vweird.f32 %v645_v19 }
 0x74f   :  { %v642_v21 = vpop.xlane.xlu0 %641 }
 0x750   :  { %v644_v24 = vmul.f32 %v642_v21, %v2324_v10  ;;  %v2084_v21 = vld [vmem:[%s2767_s10 + $0x8] sm:$0xff] }
 0x752   :  { %v2167_v25 = vpop.eup %2166  ;;  %v646_v26 = vadd.f32 1e-12, %v644_v24 }
 0x753   :  { %v648_v27 = vmul.f32 %v2167_v25, %v645_v19  ;;  %vm654_vm11 = vweird.f32 %v2167_v25 }
 0x754   :  { %2168 = vrsqrt.f32 %v646_v26  ;;  %vm655_vm13 = vmor %vm653_vm12, %vm654_vm11  ;;  %vm663_vm15 = vweird.f32 %v646_v26 }
 0x755   :  { %v649_v28 = vmul.f32 %v2167_v25, %v648_v27 }
 0x757   :  { %v650_v29 = vmul.f32 0.5, %v649_v28 }
 0x759   :  { %v651_v30 = vsub.f32 1.5, %v650_v29  ;;  %v2083_v29 = vld [vmem:[%s2767_s10] sm:$0xff] }
 0x75a   :  { %v2169_v31 = vpop.eup %2168 }
 0x75b   :  { %v652_v32 = vmul.f32 %v2167_v25, %v651_v30  ;;  %v658_v33 = vmul.f32 %v2169_v31, %v646_v26  ;;  %vm664_vm14 = vweird.f32 %v2169_v31 }
 0x75c   :  { %vm665_vm1 = vmor %vm663_vm15, %vm664_vm14 }
 0x75d   :  { %v659_v34 = vmul.f32 %v2169_v31, %v658_v33  ;;  %v656_v35 = vsel %vm655_vm13, %v2167_v25, %v652_v32  ;;  %vm842_vm13 = vcmask 523264  }
 0x75e   :  { %v667_v39 = vmul.f32 %v656_v35, %v633_v11 }
 0x75f   :  { %v660_v36 = vmul.f32 0.5, %v659_v34 }
 0x760   :  { %v672_v43 = vmul.f32 %v2124_v38, %v667_v39 }
 0x761   :  { %v661_v37 = vsub.f32 1.5, %v660_v36 }
 0x762   :  { %v2486_v46 = vadd.f32 %v2125_v42, %v672_v43 }
 0x763   :  { %v662_v40 = vmul.f32 %v2169_v31, %v661_v37 }
 0x765   :  { %v666_v41 = vsel %vm665_vm1, %v2169_v31, %v662_v40 }
 0x766   :  { %v668_v44 = vmul.f32 %v666_v41, %v634_v14  ;;  %v2085_v14 = vld [vmem:[%s2767_s10 + $0x10] sm:$0xff] }
 0x767   :  { %851 = vmatpush.bf16.msra.mxu1 %v2085_v14 }
 0x768   :  { %v673_v45 = vmul.f32 %v2124_v38, %v668_v44 }
 0x76a   :  { %v2488_v47 = vadd.f32 %v2125_v42, %v673_v45 }
 0x76b   :  { %852 = vmatpush.bf16.msra.mxu1 %v2084_v21 }
 0x76c   :  { %v683_v48 = vpack.c.bf16 %v2488_v47, %v2486_v46 }
 0x76e   :  { %1884 = vmatmul.msk.bf16.vlgmr.msra.gmra.mxu0 %vm57_vm0, %v683_v48 }
 0x76f   :  { %853 = vmatpush.bf16.msra.mxu1 %v2083_v29 }
 0x7eb   :  { %v712_v50 = vpop.f32.mrf.mxu0 }
 0x7ec   :  { %v2496_v51 = vadd.f32 %v2126_v49, %v712_v50 }
 0x7ee   :  { %v2499_v52 = vmul.f32 0.70710677, %v2496_v51 }
 0x7f0   :  { %v721_v56 = vmul.f32 %v2499_v52, %v2499_v52 }
 0x7f2   :  { %v722_v57 = vmin.f32 %v721_v56, 16.0 }
 0x7f3   :  { %v714_v58 = vpop.f32.mrf.mxu0 }
 0x7f4   :  { %v723_v59 = vmul.f32 2.1237322e-06, %v722_v57  ;;  %v734_v60 = vmul.f32 3.8918573e-05, %v722_v57  ;;  %v2503_v61 = vadd.f32 %v2126_v49, %v714_v58 }
 0x7f6   :  { %v724_v62 = vadd.f32 0.00028619796, %v723_v59  ;;  %v735_v63 = vadd.f32 0.001143296, %v734_v60  ;;  %v2506_v0 = vmul.f32 0.70710677, %v2503_v61 }
 0x7f7   :  { %v718_v14 = vmul.f32 0.5, %v2503_v61 }
 0x7f8   :  { %v736_v1 = vmul.f32 %v735_v63, %v722_v57  ;;  %v761_v2 = vmul.f32 %v2506_v0, %v2506_v0  ;;  %v725_v3 = vmul.f32 %v724_v62, %v722_v57 }
 0x7fa   :  { %v737_v4 = vadd.f32 0.014752088, %v736_v1  ;;  %v762_v5 = vmin.f32 %v761_v2, 16.0  ;;  %v726_v11 = vadd.f32 0.0036580483, %v725_v3 }
 0x7fc   :  { %v738_v6 = vmul.f32 %v737_v4, %v722_v57  ;;  %v763_v8 = vmul.f32 2.1237322e-06, %v762_v5  ;;  %v774_v9 = vmul.f32 3.8918573e-05, %v762_v5  ;;  %v727_v54 = vmul.f32 %v726_v11, %v722_v57 }
 0x7fe   :  { %v739_v55 = vadd.f32 0.112945676, %v738_v6  ;;  %v764_v12 = vadd.f32 0.00028619796, %v763_v8  ;;  %v775_v53 = vadd.f32 0.001143296, %v774_v9 }
 0x7ff   :  { %v728_v25 = vadd.f32 0.05243302, %v727_v54 }
 0x800   :  { %v740_v13 = vmul.f32 %v739_v55, %v722_v57  ;;  %v765_v15 = vmul.f32 %v764_v12, %v762_v5  ;;  %v776_v16 = vmul.f32 %v775_v53, %v762_v5 }
 0x801   :  { %v729_v31 = vmul.f32 %v728_v25, %v722_v57 }
 0x802   :  { %v741_v17 = vadd.f32 0.4994258, %v740_v13  ;;  %v766_v18 = vadd.f32 0.0036580483, %v765_v15  ;;  %v777_v19 = vadd.f32 0.014752088, %v776_v16 }
 0x803   :  { %v730_v36 = vadd.f32 0.18741608, %v729_v31  ;;  %v717_v13 = vmul.f32 0.5, %v2496_v51 }
 0x804   :  { %v742_v20 = vmul.f32 %v741_v17, %v722_v57  ;;  %v778_v24 = vmul.f32 %v777_v19, %v762_v5  ;;  %v767_v27 = vmul.f32 %v766_v18, %v762_v5 }
 0x805   :  { %v731_v41 = vmul.f32 %v730_v36, %v722_v57  ;;  %v2092_v36 = vld [vmem:[%s2760_s3 + $0xa8] sm:$0xff] }
 0x806   :  { %v743_v26 = vadd.f32 1.0, %v742_v20  ;;  %v779_v28 = vadd.f32 0.112945676, %v778_v24  ;;  %v768_v32 = vadd.f32 0.05243302, %v767_v27  ;;  %1023 = vmatpush.bf16.msrb.mxu0 %v2092_v36 }
 0x807   :  { %v732_v49 = vadd.f32 1.1283791, %v731_v41  ;;  %v2089_v41 = vld [vmem:[%s2760_s3 + $0x80] sm:$0xff] }
 0x808   :  { %2170 = vrcp.f32 %v743_v26  ;;  %v780_v30 = vmul.f32 %v779_v28, %v762_v5  ;;  %v769_v38 = vmul.f32 %v768_v32, %v762_v5  ;;  %v755_v43 = vand.u32 2147483648, %v743_v26 }
 0x809   :  { %v753_v45 = vand.u32 2147483647, %v743_v26  ;;  %vm749_vm3 = vweird.f32 %v743_v26  ;;  %v733_v63 = vmul.f32 %v732_v49, %v2499_v52 }
 0x80a   :  { %v781_v33 = vadd.f32 0.4994258, %v780_v30  ;;  %v770_v44 = vadd.f32 0.18741608, %v769_v38  ;;  %v756_v58 = vor.u32 1.1754944e-38, %v755_v43 }
 0x80b   :  { %vm754_vm5 = vcmp.eq.f32.partialorder %v753_v45, 8.507059e+37 }
 0x80c   :  { %v782_v34 = vmul.f32 %v781_v33, %v762_v5  ;;  %v771_v59 = vmul.f32 %v770_v44, %v762_v5 }
 0x80e   :  { %v2171_v35 = vpop.eup %2170  ;;  %v783_v39 = vadd.f32 1.0, %v782_v34  ;;  %v772_v57 = vadd.f32 1.1283791, %v771_v59 }
 0x80f   :  { %v745_v37 = vmul.f32 %v2171_v35, %v743_v26  ;;  %vm750_vm2 = vweird.f32 %v2171_v35 }
 0x810   :  { %2172 = vrcp.f32 %v783_v39  ;;  %vm751_vm4 = vmor %vm749_vm3, %vm750_vm2  ;;  %v795_v2 = vand.u32 2147483648, %v783_v39  ;;  %v793_v6 = vand.u32 2147483647, %v783_v39  ;;  %vm789_vm7 = vweird.f32 %v783_v39 }
 0x811   :  { %v746_v40 = vsub.f32 1.0, %v745_v37  ;;  %v773_v11 = vmul.f32 %v772_v57, %v2506_v0  ;;  %v2127_v0 = vld [vmem:[%s2768_s11] ss:$0 sm:$0xff] }
 0x812   :  { %v796_v8 = vor.u32 1.1754944e-38, %v795_v2  ;;  %vm794_vm12 = vcmp.eq.f32.partialorder %v793_v6, 8.507059e+37 }
 0x813   :  { %v747_v42 = vmul.f32 %v2171_v35, %v746_v40  ;;  %v2087_v40 = vld [vmem:[%s2760_s3 + $0x60] sm:$0xff] }
 0x815   :  { %v748_v48 = vadd.f32 %v2171_v35, %v747_v42  ;;  %v2091_v42 = vld [vmem:[%s2760_s3 + $0xa0] sm:$0xff] }
 0x816   :  { %v2173_v50 = vpop.eup %2172  ;;  %1024 = vmatpush.bf16.msrb.mxu0 %v2091_v42 }
 0x817   :  { %v752_v56 = vsel %vm751_vm4, %v2171_v35, %v748_v48  ;;  %v785_v60 = vmul.f32 %v2173_v50, %v783_v39  ;;  %vm790_vm6 = vweird.f32 %v2173_v50  ;;  %v2090_v35 = vld [vmem:[%s2760_s3 + $0x88] sm:$0xff] }
 0x818   :  { %v757_v62 = vsel %vm754_vm5, %v756_v58, %v752_v56  ;;  %vm791_vm11 = vmor %vm789_vm7, %vm790_vm6  ;;  %987 = vmatpush.bf16.msra.mxu3 %v2090_v35  ;;  %v2098_v35 = vld [vmem:[%s2760_s3 + $0xb0] sm:$0xff] }
 0x819   :  { %v786_v1 = vsub.f32 1.0, %v785_v60  ;;  %v758_v3 = vmul.f32 %v757_v62, %v733_v63 }
 0x81b   :  { %v787_v4 = vmul.f32 %v2173_v50, %v786_v1  ;;  %v1885_v9 = vclamps-f32 %v758_v3, 1.0  ;;  %v2128_v3 = vld [vmem:[%s2769_s12] ss:$0 sm:$0xff] }
 0x81c   :  { %988 = vmatpush.bf16.msra.mxu3 %v2089_v41 }
 0x81d   :  { %v788_v7 = vadd.f32 %v2173_v50, %v787_v4  ;;  %v801_v53 = vadd.f32 1.0, %v1885_v9 }
 0x81f   :  { %v792_v5 = vsel %vm791_vm11, %v2173_v50, %v788_v7  ;;  %v803_v16 = vmul.f32 %v801_v53, %v717_v13 }
 0x820   :  { %v797_v55 = vsel %vm794_vm12, %v796_v8, %v792_v5  ;;  %v2129_v8 = vld [vmem:[%s2769_s12 + $0x1] ss:$0 sm:$0xff] }
 0x821   :  { %v798_v12 = vmul.f32 %v797_v55, %v773_v11 }
 0x823   :  { %v1886_v52 = vclamps-f32 %v798_v12, 1.0 }
 0x825   :  { %v802_v15 = vadd.f32 1.0, %v1886_v52  ;;  %v2130_v52 = vld [vmem:[%s2761_s4 + $0xa] ss:$0 sm:$0xff] }
 0x827   :  { %v804_v54 = vmul.f32 %v802_v15, %v718_v14  ;;  %v2132_v15 = vld [vmem:[%s2761_s4 + $0x8] ss:$0 sm:$0xff] }
 0x829   :  { %v813_v17 = vpack.c.bf16 %v804_v54, %v803_v16 }
 0x82b   :  { %1903 = vmatmul.msk.bf16.vlgmr.msra.gmra.mxu1 %vm842_vm13, %v813_v17 }
 0x8a8   :  { %v855_v18 = vpop.f32.mrf.mxu1 }
 0x8a9   :  { %v856_v19 = vadd.f32 %v2127_v0, %v855_v18 }
 0x8ab   :  { %v860_v20 = vadd.f32 %v856_v19, %v2486_v46  ;;  %v2131_v19 = vld [vmem:[%s2761_s4 + $0x6] ss:$0 sm:$0xff] }
 0x8ad   :  { %v865_v21 = vsel %vm57_vm0, %v860_v20, 0.0 }
 0x8ae   :  { %866 = vadd.xlane.f32.xlu1 %v865_v21 }
 0x8b0   :  { %v857_v51 = vpop.f32.mrf.mxu1 }
 0x8b1   :  { %v858_v61 = vadd.f32 %v2127_v0, %v857_v51  ;;  %v2095_v51 = vld [vmem:[%s2760_s3 + $0x78] sm:$0xff] }
 0x8b3   :  { %v861_v24 = vadd.f32 %v858_v61, %v2488_v47  ;;  %v2088_v47 = vld [vmem:[%s2760_s3 + $0x68] sm:$0xff] }
 0x8b4   :  { %951 = vmatpush.bf16.msra.mxu2 %v2088_v47 }
 0x8b5   :  { %v868_v25 = vsel %vm57_vm0, %v861_v24, 0.0 }
 0x8b6   :  { %869 = vadd.xlane.f32.xlu2 %v868_v25 }
 0x8b8   :  { %952 = vmatpush.bf16.msra.mxu2 %v2087_v40 }
 0x921   :  { %v867_v26 = vpop.xlane.xlu1 %866 }
 0x922   :  { %v871_v27 = vmul.f32 %v867_v26, %v2324_v10 }
 0x924   :  { %v873_v28 = vsub.f32 %v860_v20, %v871_v27  ;;  %v2094_v27 = vld [vmem:[%s2760_s3 + $0x70] sm:$0xff] }
 0x926   :  { %v875_v29 = vmul.f32 %v873_v28, %v873_v28 }
 0x928   :  { %v877_v30 = vsel %vm57_vm0, %v875_v29, 0.0 }
 0x929   :  { %v870_v31 = vpop.xlane.xlu2 %869  ;;  %878 = vadd.xlane.f32.xlu0 %v877_v30 }
 0x92a   :  { %v872_v46 = vmul.f32 %v870_v31, %v2324_v10 }
 0x92c   :  { %v874_v32 = vsub.f32 %v861_v24, %v872_v46 }
 0x92e   :  { %v876_v33 = vmul.f32 %v874_v32, %v874_v32 }
 0x930   :  { %v880_v34 = vsel %vm57_vm0, %v876_v33, 0.0 }
 0x931   :  { %881 = vadd.xlane.f32.xlu1 %v880_v34 }
 0x99c   :  { %v879_v37 = vpop.xlane.xlu0 %878 }
 0x99d   :  { %v883_v38 = vmul.f32 %v879_v37, %v2324_v10 }
 0x99f   :  { %v885_v39 = vadd.f32 1e-12, %v883_v38 }
 0x9a1   :  { %2174 = vrsqrt.f32 %v885_v39  ;;  %vm893_vm15 = vweird.f32 %v885_v39 }
 0x9a4   :  { %v882_v43 = vpop.xlane.xlu1 %881 }
 0x9a5   :  { %v884_v44 = vmul.f32 %v882_v43, %v2324_v10 }
 0x9a7   :  { %v2175_v45 = vpop.eup %2174  ;;  %v886_v48 = vadd.f32 1e-12, %v884_v44 }
 0x9a8   :  { %v888_v49 = vmul.f32 %v2175_v45, %v885_v39  ;;  %vm894_vm14 = vweird.f32 %v2175_v45 }
 0x9a9   :  { %2176 = vrsqrt.f32 %v886_v48  ;;  %vm895_vm1 = vmor %vm893_vm15, %vm894_vm14  ;;  %vm903_vm3 = vweird.f32 %v886_v48 }
 0x9aa   :  { %v889_v50 = vmul.f32 %v2175_v45, %v888_v49 }
 0x9ac   :  { %v890_v56 = vmul.f32 0.5, %v889_v50 }
 0x9ae   :  { %v891_v58 = vsub.f32 1.5, %v890_v56 }
 0x9af   :  { %v2177_v59 = vpop.eup %2176 }
 0x9b0   :  { %v892_v60 = vmul.f32 %v2175_v45, %v891_v58  ;;  %v898_v62 = vmul.f32 %v2177_v59, %v886_v48  ;;  %vm904_vm2 = vweird.f32 %v2177_v59 }
 0x9b1   :  { %vm905_vm4 = vmor %vm903_vm3, %vm904_vm2 }
 0x9b2   :  { %v899_v63 = vmul.f32 %v2177_v59, %v898_v62  ;;  %v896_v1 = vsel %vm895_vm1, %v2175_v45, %v892_v60  ;;  %v2134_v45 = vld [vmem:[%s2761_s4 + $0xb] ss:$0 sm:$0xff] }
 0x9b3   :  { %v907_v4 = vmul.f32 %v896_v1, %v873_v28 }
 0x9b4   :  { %v900_v57 = vmul.f32 0.5, %v899_v63 }
 0x9b5   :  { %v912_v9 = vmul.f32 %v2128_v3, %v907_v4 }
 0x9b6   :  { %v901_v2 = vsub.f32 1.5, %v900_v57 }
 0x9b7   :  { %v2564_v55 = vadd.f32 %v2129_v8, %v912_v9 }
 0x9b8   :  { %v902_v6 = vmul.f32 %v2177_v59, %v901_v2 }
 0x9ba   :  { %v906_v7 = vsel %vm905_vm4, %v2177_v59, %v902_v6 }
 0x9bb   :  { %v908_v11 = vmul.f32 %v906_v7, %v874_v32  ;;  %v2099_v32 = vld [vmem:[%s2760_s3 + $0xb8] sm:$0xff] }
 0x9bd   :  { %v913_v5 = vmul.f32 %v2128_v3, %v908_v11  ;;  %v2097_v11 = vld [vmem:[%s2760_s3 + $0x98] sm:$0xff] }
 0x9bf   :  { %v2566_v12 = vadd.f32 %v2129_v8, %v913_v5  ;;  %v2096_v5 = vld [vmem:[%s2760_s3 + $0x90] sm:$0xff] }
 0x9c1   :  { %v2570_v53 = vpack.c.bf16 %v2566_v12, %v2564_v55 }
 0x9c3   :  { %1918 = vmatmul.msk.bf16.vlgmr.msra.gmra.mxu2 %vm57_vm0, %v2570_v53  ;;  %1932 = vmatmul.msk.bf16.vlgmr.msra.gmra.mxu3 %vm57_vm0, %v2570_v53 }
 0x9c4   :  { %1946 = vmatmul.msk.bf16.vlgmr.msrb.gmra.mxu0 %vm57_vm0, %v2570_v53 }
 0xa41   :  { %v1026_v13 = vpop.f32.mrf.mxu0 }
 0xa42   :  { %v1027_v14 = vadd.f32 %v2130_v52, %v1026_v13 }
 0xa44   :  { %v1064_v16 = vpack.c.bf16 %v1027_v14, %v1027_v14 }
 0xa46   :  { %v1069_v54 = vsel %vm272_vm9, %v1064_v16, 0  ;;  %v990_v17 = vpop.f32.mrf.mxu3  ;;  %v954_v18 = vpop.f32.mrf.mxu2 }
 0xa47   :  { %v991_v0 = vadd.f32 %v2132_v15, %v990_v17  ;;  %1078 = vmatpush.bf16.msrb.mxu2 %v1069_v54  ;;  %v955_v26 = vadd.f32 %v2131_v19, %v954_v18 }
 0xa49   :  { %v1032_v20 = vpack.c.bf16 %v991_v0, %v991_v0  ;;  %v1028_v21 = vpop.f32.mrf.mxu0  ;;  %v1031_v31 = vpack.c.bf16 %v955_v26, %v955_v26 }
 0xa4a   :  { %v1029_v61 = vadd.f32 %v2130_v52, %v1028_v21 }
 0xa4b   :  { %v1037_v24 = vsel %vm235_vm8, %v1032_v20, 0  ;;  %1205 = vmatpush.bf16.msra.mxu2 %v2097_v11 }
 0xa4c   :  { %v1117_v25 = vpack.c.bf16 %v1029_v61, %v1029_v61  ;;  %1046 = vmatpush.bf16.xpose.msrb.mxu1 %v1037_v24 }
 0xa4e   :  { %v1122_v28 = vsel %vm272_vm9, %v1117_v25, 0  ;;  %v992_v29 = vpop.f32.mrf.mxu3  ;;  %v956_v33 = vpop.f32.mrf.mxu2 }
 0xa4f   :  { %v993_v30 = vadd.f32 %v2132_v15, %v992_v29  ;;  %1131 = vmatpush.bf16.msra.mxu0 %v1122_v28  ;;  %v957_v47 = vadd.f32 %v2131_v19, %v956_v33  ;;  %1206 = vmatpush.bf16.msra.mxu2 %v2096_v5 }
 0xa51   :  { %v1085_v46 = vpack.c.bf16 %v993_v30, %v993_v30  ;;  %v1084_v36 = vpack.c.bf16 %v957_v47, %v957_v47 }
 0xa53   :  { %v1090_v34 = vsel %vm235_vm8, %v1085_v46, 0  ;;  %1947 = vmatmul.msk.bf16.vlgmr.msrb.gmra.mxu1 %vm235_vm8, %v1031_v31 }
 0xa54   :  { %1169 = vmatpush.bf16.msra.mxu1 %v2095_v51  ;;  %1099 = vmatpush.bf16.xpose.msrb.mxu3 %v1090_v34  ;;  %v2135_v51 = vld [vmem:[%s2761_s4 + $0x9] ss:$0 sm:$0xff] }
 0xa58   :  { %1170 = vmatpush.bf16.msra.mxu1 %v2094_v27  ;;  %v2133_v27 = vld [vmem:[%s2761_s4 + $0x7] ss:$0 sm:$0xff] }
 0xa5b   :  { %1949 = vmatmul.msk.bf16.vlgmr.msrb.gmra.mxu3 %vm235_vm8, %v1084_v36 }
 0xa5c   :  { %1241 = vmatpush.bf16.msra.mxu3 %v2099_v32 }
 0xa60   :  { %1242 = vmatpush.bf16.msra.mxu3 %v2098_v35 }
 0xa63   :  { %1966 = vmatmul.msk.bf16.vlgmr.msra.gmra.mxu1 %vm57_vm0, %v2570_v53 }
 0xa6b   :  { %1994 = vmatmul.msk.bf16.vlgmr.msra.gmra.mxu3 %vm57_vm0, %v2570_v53 }
 0xad0   :  { %v1048_v37 = vpop.f32.mrf.mxu1 }
 0xad1   :  { %v1049_v38 = vadd.f32 %v2404_v22, %v1048_v37 }
 0xad3   :  { %v1052_v39 = vsel %vm255_vm10, %v1049_v38, -inf }
 0xad4   :  { %1053 = vmax.xlane.f32.xlu2 %v1052_v39 }
 0xad8   :  { %v1050_v40 = vpop.f32.mrf.mxu1 }
 0xade   :  { %v1101_v41 = vpop.f32.mrf.mxu3 }
 0xadf   :  { %v1102_v42 = vadd.f32 %v2409_v23, %v1101_v41 }
 0xae0   :  { %v1172_v26 = vpop.f32.mrf.mxu1 }
 0xae1   :  { %v1105_v43 = vsel %vm255_vm10, %v1102_v42, -inf  ;;  %v1173_v29 = vadd.f32 %v2133_v27, %v1172_v26 }
 0xae2   :  { %1106 = vmax.xlane.f32.xlu1 %v1105_v43 }
 0xae3   :  { %v1249_v46 = vpack.c.bf16 %v1173_v29, %v1173_v29 }
 0xae6   :  { %v1103_v44 = vpop.f32.mrf.mxu3 }
 0xae8   :  { %v1174_v33 = vpop.f32.mrf.mxu1 }
 0xae9   :  { %v1175_v47 = vadd.f32 %v2133_v27, %v1174_v33 }
 0xaeb   :  { %v1302_v35 = vpack.c.bf16 %v1175_v47, %v1175_v47 }
 0xaee   :  { %v1244_v48 = vpop.f32.mrf.mxu3 }
 0xaef   :  { %v1245_v49 = vadd.f32 %v2134_v45, %v1244_v48 }
 0xaf1   :  { %v1282_v50 = vpack.c.bf16 %v1245_v49, %v1245_v49 }
 0xaf3   :  { %v1287_v56 = vsel %vm272_vm9, %v1282_v50, 0 }
 0xaf4   :  { %1296 = vmatpush.bf16.msrb.mxu1 %v1287_v56 }
 0xaf6   :  { %v1246_v58 = vpop.f32.mrf.mxu3 }
 0xaf7   :  { %v1247_v59 = vadd.f32 %v2134_v45, %v1246_v58 }
 0xaf9   :  { %v1335_v60 = vpack.c.bf16 %v1247_v59, %v1247_v59 }
 0xafb   :  { %v1340_v62 = vsel %vm272_vm9, %v1335_v60, 0 }
 0xafc   :  { %1349 = vmatpush.bf16.msrb.mxu3 %v1340_v62 }
 0xb47   :  { %v1054_v63 = vpop.xlane.xlu2 %1053 }
 0xb48   :  { %v1055_v1 = vsub.f32 %v1049_v38, %v1054_v63 }
 0xb4a   :  { %v1056_v57 = vmul.f32 1.442695, %v1055_v1 }
 0xb4c   :  { %2178 = vpow2.f32 %v1056_v57 }
 0xb52   :  { %v2179_v2 = vpop.eup %2178 }
 0xb53   :  { %v1058_v3 = vsel %vm255_vm10, %v2179_v2, 0.0 }
 0xb54   :  { %1059 = vadd.xlane.f32.xlu0 %v1058_v3 }
 0xb55   :  { %v1107_v4 = vpop.xlane.xlu1 %1106 }
 0xb56   :  { %v1108_v6 = vsub.f32 %v1102_v42, %v1107_v4 }
 0xb58   :  { %v1109_v7 = vmul.f32 1.442695, %v1108_v6 }
 0xb5a   :  { %2180 = vpow2.f32 %v1109_v7  ;;  %v2100_v7 = vld [vmem:[%s2762_s5 + $0x18] sm:$0xff] }
 0xb60   :  { %v2181_v8 = vpop.eup %2180 }
 0xb61   :  { %v1111_v9 = vsel %vm255_vm10, %v2181_v8, 0.0 }
 0xb62   :  { %1112 = vadd.xlane.f32.xlu2 %v1111_v9 }
 0xbc7   :  { %v1060_v52 = vpop.xlane.xlu0 %1059 }
 0xbc8   :  { %2182 = vrcp.f32 %v1060_v52 }
 0xbce   :  { %v2183_v13 = vpop.eup %2182 }
 0xbcf   :  { %v1062_v14 = vmul.f32 %v2183_v13, %v2179_v2 }
 0xbd1   :  { %v1063_v15 = vpack.c.bf16 %v1062_v14, %v1062_v14  ;;  %v2136_v14 = vld [vmem:[%s2763_s6 + $0x1] ss:$0 sm:$0xff] }
 0xbd3   :  { %1948 = vmatmul.msk.bf16.vlgmr.msrb.gmra.mxu2 %vm255_vm10, %v1063_v15 }
 0xbd5   :  { %v1113_v16 = vpop.xlane.xlu2 %1112 }
 0xbd6   :  { %2184 = vrcp.f32 %v1113_v16 }
 0xbdc   :  { %v2185_v54 = vpop.eup %2184 }
 0xbdd   :  { %v1115_v17 = vmul.f32 %v2185_v54, %v2181_v8 }
 0xbdf   :  { %v1116_v0 = vpack.c.bf16 %v1115_v17, %v1115_v17 }
 0xbe1   :  { %1950 = vmatmul.msk.bf16.vlgmr.msra.gmra.mxu0 %vm255_vm10, %v1116_v0 }
 0xbe3   :  { %1980 = vmatmul.msk.bf16.vlgmr.msra.gmra.mxu2 %vm57_vm0, %v2570_v53 }
 0xc56   :  { %v2630_v18 = vpop.f32.mrf.mxu2 }
 0xc5e   :  { %v1082_v19 = vpop.f32.mrf.mxu2  ;;  %v1133_v20 = vpop.f32.mrf.mxu0 }
 0xc5f   :  { %v1140_v21 = vpack.c.bf16 %v1133_v20, %v2630_v18 }
 0xc66   :  { %v1135_v61 = vpop.f32.mrf.mxu0  ;;  %v1208_v24 = vpop.f32.mrf.mxu2 }
 0xc67   :  { %v1209_v25 = vadd.f32 %v2135_v51, %v1208_v24 }
 0xc69   :  { %v1250_v28 = vpack.c.bf16 %v1209_v25, %v1209_v25 }
 0xc6b   :  { %v1255_v53 = vsel %vm235_vm8, %v1250_v28, 0 }
 0xc6c   :  { %1264 = vmatpush.bf16.xpose.msrb.mxu0 %v1255_v53 }
 0xc6e   :  { %v1210_v30 = vpop.f32.mrf.mxu2 }
 0xc6f   :  { %v1211_v31 = vadd.f32 %v2135_v51, %v1210_v30 }
 0xc71   :  { %v1303_v32 = vpack.c.bf16 %v1211_v31, %v1211_v31 }
 0xc73   :  { %v1308_v34 = vsel %vm235_vm8, %v1303_v32, 0  ;;  %1995 = vmatmul.msk.bf16.vlgmr.msrb.gmra.mxu0 %vm235_vm8, %v1249_v46 }
 0xc74   :  { %1317 = vmatpush.bf16.xpose.msrb.mxu2 %v1308_v34  ;;  %1375 = vmatpush.bf16.msra.mxu0 %v2100_v7  ;;  %v2101_v34 = vld [vmem:[%s2765_s8 + $0x10] sm:$0xff] }
 0xc7b   :  { %1997 = vmatmul.msk.bf16.vlgmr.msrb.gmra.mxu2 %vm235_vm8, %v1302_v35 }
 0xcf0   :  { %v1266_v36 = vpop.f32.mrf.mxu0 }
 0xcf1   :  { %v1267_v37 = vadd.f32 %v2404_v22, %v1266_v36 }
 0xcf3   :  { %v1270_v38 = vsel %vm255_vm10, %v1267_v37, -inf }
 0xcf4   :  { %1271 = vmax.xlane.f32.xlu1 %v1270_v38 }
 0xcf8   :  { %v1268_v39 = vpop.f32.mrf.mxu0 }
 0xcfe   :  { %v1319_v40 = vpop.f32.mrf.mxu2 }
 0xcff   :  { %v1320_v41 = vadd.f32 %v2409_v23, %v1319_v40  ;;  %v2093_v23 = vld [vmem:[%s2762_s5 + $0x10] sm:$0xff] }
 0xd00   :  { %1398 = vmatpush.bf16.msra.mxu1 %v2093_v23 }
 0xd01   :  { %v1323_v42 = vsel %vm255_vm10, %v1320_v41, -inf }
 0xd02   :  { %1324 = vmax.xlane.f32.xlu0 %v1323_v42 }
 0xd06   :  { %v1321_v43 = vpop.f32.mrf.mxu2 }
 0xd67   :  { %v1272_v44 = vpop.xlane.xlu1 %1271 }
 0xd68   :  { %v1273_v45 = vsub.f32 %v1267_v37, %v1272_v44 }
 0xd6a   :  { %v1274_v48 = vmul.f32 1.442695, %v1273_v45 }
 0xd6c   :  { %2186 = vpow2.f32 %v1274_v48 }
 0xd72   :  { %v2187_v49 = vpop.eup %2186 }
 0xd73   :  { %v1276_v50 = vsel %vm255_vm10, %v2187_v49, 0.0 }
 0xd74   :  { %1277 = vadd.xlane.f32.xlu0 %v1276_v50 }
 0xd75   :  { %v1325_v22 = vpop.xlane.xlu0 %1324 }
 0xd76   :  { %v1326_v56 = vsub.f32 %v1320_v41, %v1325_v22  ;;  %v2137_v22 = vld [vmem:[%s2764_s7 + $0x2] ss:$0 sm:$0xff] }
 0xd78   :  { %v1327_v58 = vmul.f32 1.442695, %v1326_v56 }
 0xd7a   :  { %2188 = vpow2.f32 %v1327_v58 }
 0xd80   :  { %v2189_v59 = vpop.eup %2188 }
 0xd81   :  { %v1329_v60 = vsel %vm255_vm10, %v2189_v59, 0.0 }
 0xd82   :  { %1330 = vadd.xlane.f32.xlu2 %v1329_v60  ;;  %v2138_v60 = vld [vmem:[%s2764_s7 + $0x3] ss:$0 sm:$0xff] }
 0xde7   :  { %v1278_v62 = vpop.xlane.xlu0 %1277 }
 0xde8   :  { %2190 = vrcp.f32 %v1278_v62 }
 0xdee   :  { %v2191_v63 = vpop.eup %2190 }
 0xdef   :  { %v1280_v1 = vmul.f32 %v2191_v63, %v2187_v49 }
 0xdf1   :  { %v1281_v57 = vpack.c.bf16 %v1280_v1, %v1280_v1 }
 0xdf3   :  { %1996 = vmatmul.msk.bf16.vlgmr.msrb.gmra.mxu1 %vm255_vm10, %v1281_v57 }
 0xdf5   :  { %v1331_v2 = vpop.xlane.xlu2 %1330 }
 0xdf6   :  { %2192 = vrcp.f32 %v1331_v2 }
 0xdfc   :  { %v2193_v3 = vpop.eup %2192 }
 0xdfd   :  { %v1333_v4 = vmul.f32 %v2193_v3, %v2189_v59  ;;  %v2139_v3 = vld [vmem:[%s2766_s9 + $0x1] ss:$0 sm:$0xff] }
 0xdff   :  { %v1334_v6 = vpack.c.bf16 %v1333_v4, %v1333_v4 }
 0xe01   :  { %1998 = vmatmul.msk.bf16.vlgmr.msrb.gmra.mxu3 %vm255_vm10, %v1334_v6 }
 0xe03   :  { %2010 = vmatmul.msk.bf16.vlgmr.msra.gmra.mxu1 %vm235_vm8, %v1140_v21 }
 0xe70   :  { %v1298_v8 = vpop.f32.mrf.mxu1 }
 0xe78   :  { %v1300_v9 = vpop.f32.mrf.mxu1 }
 0xe80   :  { %v1400_v13 = vpop.f32.mrf.mxu1 }
 0xe84   :  { %v1351_v11 = vpop.f32.mrf.mxu3 }
 0xe85   :  { %v1358_v5 = vpack.c.bf16 %v1351_v11, %v1298_v8 }
 0xe87   :  { %2005 = vmatmul.msk.bf16.vlgmr.msra.gmra.mxu0 %vm235_vm8, %v1358_v5 }
 0xe88   :  { %v1402_v18 = vpop.f32.mrf.mxu1 }
 0xe8c   :  { %v1353_v52 = vpop.f32.mrf.mxu3 }
 0xf04   :  { %v1377_v15 = vpop.f32.mrf.mxu0 }
 0xf05   :  { %v1401_v16 = vadd.f32 %v1400_v13, %v1377_v15 }
 0xf07   :  { %v1410_v54 = vadd.f32 %v2136_v14, %v1401_v16 }
 0xf09   :  { %v1412_v17 = vadd.f32 %v1410_v54, %v2564_v55 }
 0xf0b   :  { %v1418_v0 = vsel %vm57_vm0, %v1412_v17, 0.0 }
 0xf0c   :  { %1419 = vadd.xlane.f32.xlu1 %v1418_v0  ;;  %v1379_v19 = vpop.f32.mrf.mxu0 }
 0xf0d   :  { %v1403_v20 = vadd.f32 %v1402_v18, %v1379_v19 }
 0xf0f   :  { %v1411_v21 = vadd.f32 %v2136_v14, %v1403_v20 }
 0xf11   :  { %v1413_v51 = vadd.f32 %v1411_v21, %v2566_v12  ;;  %v2102_v12 = vld [vmem:[%s2765_s8 + $0x18] sm:$0xff] }
 0xf12   :  { %1504 = vmatpush.bf16.msra.mxu2 %v2102_v12  ;;  %v2106_v21 = vld [vmem:[%s2767_s10 + $0x38] sm:$0xff] }
 0xf13   :  { %v1421_v61 = vsel %vm57_vm0, %v1413_v51, 0.0  ;;  %1646 = vmatpush.bf16.msra.mxu3 %v2106_v21 }
 0xf14   :  { %1422 = vadd.xlane.f32.xlu2 %v1421_v61 }
 0xf16   :  { %1505 = vmatpush.bf16.msra.mxu2 %v2101_v34 }
 0xf7f   :  { %v1420_v24 = vpop.xlane.xlu1 %1419 }
 0xf80   :  { %v1424_v25 = vmul.f32 %v1420_v24, %v2324_v10 }
 0xf82   :  { %v1426_v26 = vsub.f32 %v1412_v17, %v1424_v25 }
 0xf84   :  { %v1428_v27 = vmul.f32 %v1426_v26, %v1426_v26 }
 0xf86   :  { %v1430_v28 = vsel %vm57_vm0, %v1428_v27, 0.0 }
 0xf87   :  { %1431 = vadd.xlane.f32.xlu0 %v1430_v28  ;;  %v1423_v55 = vpop.xlane.xlu2 %1422 }
 0xf88   :  { %v1425_v53 = vmul.f32 %v1423_v55, %v2324_v10  ;;  %v2105_v55 = vld [vmem:[%s2767_s10 + $0x30] sm:$0xff] }
 0xf89   :  { %1647 = vmatpush.bf16.msra.mxu3 %v2105_v55 }
 0xf8a   :  { %v1427_v29 = vsub.f32 %v1413_v51, %v1425_v53 }
 0xf8c   :  { %v1429_v30 = vmul.f32 %v1427_v29, %v1427_v29 }
 0xf8e   :  { %v1433_v31 = vsel %vm57_vm0, %v1429_v30, 0.0 }
 0xf8f   :  { %1434 = vadd.xlane.f32.xlu1 %v1433_v31 }
 0xffa   :  { %v1432_v46 = vpop.xlane.xlu0 %1431 }
 0xffb   :  { %v1436_v32 = vmul.f32 %v1432_v46, %v2324_v10 }
 0xffd   :  { %v1438_v33 = vadd.f32 1e-12, %v1436_v32 }
 0xfff   :  { %2194 = vrsqrt.f32 %v1438_v33  ;;  %vm1446_vm9 = vweird.f32 %v1438_v33 }
0x1002   :  { %v1435_v47 = vpop.xlane.xlu1 %1434 }
0x1003   :  { %v1437_v35 = vmul.f32 %v1435_v47, %v2324_v10 }
0x1005   :  { %v2195_v36 = vpop.eup %2194  ;;  %v1439_v37 = vadd.f32 1e-12, %v1437_v35 }
0x1006   :  { %v1441_v38 = vmul.f32 %v2195_v36, %v1438_v33  ;;  %vm1447_vm8 = vweird.f32 %v2195_v36  ;;  %v2104_v33 = vld [vmem:[%s2767_s10 + $0x28] sm:$0xff] }
0x1007   :  { %2196 = vrsqrt.f32 %v1439_v37  ;;  %vm1448_vm10 = vmor %vm1446_vm9, %vm1447_vm8  ;;  %vm1456_vm6 = vweird.f32 %v1439_v37  ;;  %1648 = vmatpush.bf16.msra.mxu3 %v2104_v33 }
0x1008   :  { %v1442_v39 = vmul.f32 %v2195_v36, %v1441_v38  ;;  %v2103_v38 = vld [vmem:[%s2767_s10 + $0x20] sm:$0xff] }
0x100a   :  { %v1443_v40 = vmul.f32 0.5, %v1442_v39 }
0x100b   :  { %1649 = vmatpush.bf16.msra.mxu3 %v2103_v38 }
0x100c   :  { %v1444_v41 = vsub.f32 1.5, %v1443_v40 }
0x100d   :  { %v2197_v42 = vpop.eup %2196 }
0x100e   :  { %v1445_v43 = vmul.f32 %v2195_v36, %v1444_v41  ;;  %v1451_v44 = vmul.f32 %v2197_v42, %v1439_v37  ;;  %vm1457_vm5 = vweird.f32 %v2197_v42 }
0x100f   :  { %vm1458_vm7 = vmor %vm1456_vm6, %vm1457_vm5 }
0x1010   :  { %v1452_v45 = vmul.f32 %v2197_v42, %v1451_v44  ;;  %v1449_v48 = vsel %vm1448_vm10, %v2195_v36, %v1445_v43 }
0x1011   :  { %v1460_v56 = vmul.f32 %v1449_v48, %v1426_v26 }
0x1012   :  { %v1453_v49 = vmul.f32 0.5, %v1452_v45 }
0x1013   :  { %v1465_v23 = vmul.f32 %v2137_v22, %v1460_v56 }
0x1014   :  { %v1454_v50 = vsub.f32 1.5, %v1453_v49 }
0x1015   :  { %v2684_v1 = vadd.f32 %v2138_v60, %v1465_v23 }
0x1016   :  { %v1455_v58 = vmul.f32 %v2197_v42, %v1454_v50 }
0x1018   :  { %v1459_v59 = vsel %vm1458_vm7, %v2197_v42, %v1455_v58 }
0x1019   :  { %v1461_v62 = vmul.f32 %v1459_v59, %v1427_v29 }
0x101b   :  { %v1466_v63 = vmul.f32 %v2137_v22, %v1461_v62 }
0x101d   :  { %v2686_v57 = vadd.f32 %v2138_v60, %v1466_v63 }
0x101f   :  { %v1477_v2 = vpack.c.bf16 %v2686_v57, %v2684_v1 }
0x1021   :  { %2027 = vmatmul.msk.bf16.vlgmr.msra.gmra.mxu2 %vm57_vm0, %v1477_v2 }
0x10a4   :  { %v1507_v4 = vpop.f32.mrf.mxu2 }
0x10a5   :  { %v2694_v6 = vadd.f32 %v2139_v3, %v1507_v4 }
0x10a7   :  { %v2697_v7 = vmul.f32 0.70710677, %v2694_v6 }
0x10a9   :  { %v1516_v8 = vmul.f32 %v2697_v7, %v2697_v7 }
0x10ab   :  { %v1517_v9 = vmin.f32 %v1516_v8, 16.0 }
0x10ac   :  { %v1509_v11 = vpop.f32.mrf.mxu2 }
0x10ad   :  { %v1518_v5 = vmul.f32 2.1237322e-06, %v1517_v9  ;;  %v1529_v52 = vmul.f32 3.8918573e-05, %v1517_v9  ;;  %v2701_v13 = vadd.f32 %v2139_v3, %v1509_v11 }
0x10af   :  { %v1519_v14 = vadd.f32 0.00028619796, %v1518_v5  ;;  %v1530_v15 = vadd.f32 0.001143296, %v1529_v52  ;;  %v2704_v16 = vmul.f32 0.70710677, %v2701_v13 }
0x10b1   :  { %v1531_v54 = vmul.f32 %v1530_v15, %v1517_v9  ;;  %v1556_v17 = vmul.f32 %v2704_v16, %v2704_v16  ;;  %v1520_v0 = vmul.f32 %v1519_v14, %v1517_v9 }
0x10b3   :  { %v1532_v18 = vadd.f32 0.014752088, %v1531_v54  ;;  %v1557_v19 = vmin.f32 %v1556_v17, 16.0  ;;  %v1521_v24 = vadd.f32 0.0036580483, %v1520_v0 }
0x10b5   :  { %v1533_v20 = vmul.f32 %v1532_v18, %v1517_v9  ;;  %v1558_v51 = vmul.f32 2.1237322e-06, %v1557_v19  ;;  %v1569_v61 = vmul.f32 3.8918573e-05, %v1557_v19  ;;  %v1522_v30 = vmul.f32 %v1521_v24, %v1517_v9 }
0x10b7   :  { %v1534_v25 = vadd.f32 0.112945676, %v1533_v20  ;;  %v1559_v26 = vadd.f32 0.00028619796, %v1558_v51  ;;  %v1570_v27 = vadd.f32 0.001143296, %v1569_v61 }
0x10b8   :  { %v1523_v47 = vadd.f32 0.05243302, %v1522_v30 }
0x10b9   :  { %v1535_v28 = vmul.f32 %v1534_v25, %v1517_v9  ;;  %v1560_v53 = vmul.f32 %v1559_v26, %v1557_v19  ;;  %v1571_v29 = vmul.f32 %v1570_v27, %v1557_v19  ;;  %v1512_v26 = vmul.f32 0.5, %v2694_v6 }
0x10ba   :  { %v1524_v40 = vmul.f32 %v1523_v47, %v1517_v9  ;;  %v1513_v27 = vmul.f32 0.5, %v2701_v13 }
0x10bb   :  { %v1536_v31 = vadd.f32 0.4994258, %v1535_v28  ;;  %v1561_v12 = vadd.f32 0.0036580483, %v1560_v53  ;;  %v1572_v46 = vadd.f32 0.014752088, %v1571_v29 }
0x10bc   :  { %v1525_v45 = vadd.f32 0.18741608, %v1524_v40 }
0x10bd   :  { %v1537_v32 = vmul.f32 %v1536_v31, %v1517_v9  ;;  %v1573_v34 = vmul.f32 %v1572_v46, %v1557_v19  ;;  %v1562_v36 = vmul.f32 %v1561_v12, %v1557_v19 }
0x10be   :  { %v1526_v56 = vmul.f32 %v1525_v45, %v1517_v9  ;;  %v2107_v45 = vld [vmem:[%s2770_s13] sm:$0xff] }
0x10bf   :  { %v1538_v35 = vadd.f32 1.0, %v1537_v32  ;;  %v1574_v37 = vadd.f32 0.112945676, %v1573_v34  ;;  %v1563_v41 = vadd.f32 0.05243302, %v1562_v36 }
0x10c0   :  { %v1527_v63 = vadd.f32 1.1283791, %v1526_v56 }
0x10c1   :  { %2198 = vrcp.f32 %v1538_v35  ;;  %v1575_v39 = vmul.f32 %v1574_v37, %v1557_v19  ;;  %v1564_v49 = vmul.f32 %v1563_v41, %v1557_v19  ;;  %v1550_v59 = vand.u32 2147483648, %v1538_v35 }
0x10c2   :  { %v1548_v23 = vand.u32 2147483647, %v1538_v35  ;;  %vm1544_vm12 = vweird.f32 %v1538_v35  ;;  %v1528_v52 = vmul.f32 %v1527_v63, %v2697_v7 }
0x10c3   :  { %v1576_v42 = vadd.f32 0.4994258, %v1575_v39  ;;  %v1565_v60 = vadd.f32 0.18741608, %v1564_v49  ;;  %v1551_v4 = vor.u32 1.1754944e-38, %v1550_v59 }
0x10c4   :  { %vm1549_vm15 = vcmp.eq.f32.partialorder %v1548_v23, 8.507059e+37 }
0x10c5   :  { %v1577_v43 = vmul.f32 %v1576_v42, %v1557_v19  ;;  %v1566_v8 = vmul.f32 %v1565_v60, %v1557_v19 }
0x10c7   :  { %v2199_v44 = vpop.eup %2198  ;;  %v1578_v50 = vadd.f32 1.0, %v1577_v43  ;;  %v1567_v9 = vadd.f32 1.1283791, %v1566_v8 }
0x10c8   :  { %v1540_v48 = vmul.f32 %v2199_v44, %v1538_v35  ;;  %vm1545_vm11 = vweird.f32 %v2199_v44 }
0x10c9   :  { %2200 = vrcp.f32 %v1578_v50  ;;  %vm1546_vm14 = vmor %vm1544_vm12, %vm1545_vm11  ;;  %v1590_v15 = vand.u32 2147483648, %v1578_v50  ;;  %v1588_v0 = vand.u32 2147483647, %v1578_v50  ;;  %vm1584_vm2 = vweird.f32 %v1578_v50 }
0x10ca   :  { %v1541_v22 = vsub.f32 1.0, %v1540_v48  ;;  %v1568_v51 = vmul.f32 %v1567_v9, %v2704_v16  ;;  %v2140_v16 = vld [vmem:[%s2768_s11 + $0x1] ss:$0 sm:$0xff] }
0x10cb   :  { %v1591_v20 = vor.u32 1.1754944e-38, %v1590_v15  ;;  %vm1589_vm4 = vcmp.eq.f32.partialorder %v1588_v0, 8.507059e+37 }
0x10cc   :  { %v1542_v58 = vmul.f32 %v2199_v44, %v1541_v22 }
0x10ce   :  { %v1543_v62 = vadd.f32 %v2199_v44, %v1542_v58 }
0x10cf   :  { %v2201_v2 = vpop.eup %2200 }
0x10d0   :  { %v1547_v3 = vsel %vm1546_vm14, %v2199_v44, %v1543_v62  ;;  %v1580_v11 = vmul.f32 %v2201_v2, %v1578_v50  ;;  %vm1585_vm1 = vweird.f32 %v2201_v2 }
0x10d1   :  { %v1552_v5 = vsel %vm1549_vm15, %v1551_v4, %v1547_v3  ;;  %vm1586_vm3 = vmor %vm1584_vm2, %vm1585_vm1 }
0x10d2   :  { %v1581_v14 = vsub.f32 1.0, %v1580_v11  ;;  %v1553_v54 = vmul.f32 %v1552_v5, %v1528_v52 }
0x10d4   :  { %v1582_v17 = vmul.f32 %v2201_v2, %v1581_v14  ;;  %v2028_v21 = vclamps-f32 %v1553_v54, 1.0  ;;  %v2142_v14 = vld [vmem:[%s2769_s12 + $0x3] ss:$0 sm:$0xff] }
0x10d6   :  { %v1583_v18 = vadd.f32 %v2201_v2, %v1582_v17  ;;  %v1596_v25 = vadd.f32 1.0, %v2028_v21 }
0x10d8   :  { %v1587_v19 = vsel %vm1586_vm3, %v2201_v2, %v1583_v18  ;;  %v1598_v55 = vmul.f32 %v1596_v25, %v1512_v26 }
0x10d9   :  { %v1592_v61 = vsel %vm1589_vm4, %v1591_v20, %v1587_v19  ;;  %v2143_v20 = vld [vmem:[%s2771_s14] ss:$0 sm:$0xff] }
0x10da   :  { %v1593_v24 = vmul.f32 %v1592_v61, %v1568_v51 }
0x10dc   :  { %v2029_v7 = vclamps-f32 %v1593_v24, 1.0 }
0x10de   :  { %v1597_v28 = vadd.f32 1.0, %v2029_v7 }
0x10e0   :  { %v1599_v53 = vmul.f32 %v1597_v28, %v1513_v27 }
0x10e2   :  { %v1609_v29 = vpack.c.bf16 %v1599_v53, %v1598_v55 }
0x10e4   :  { %2055 = vmatmul.msk.bf16.vlgmr.msra.gmra.mxu3 %vm842_vm13, %v1609_v29 }
0x1167   :  { %v1651_v30 = vpop.f32.mrf.mxu3 }
0x1168   :  { %v1652_v31 = vadd.f32 %v2140_v16, %v1651_v30 }
0x116a   :  { %v1656_v12 = vadd.f32 %v1652_v31, %v2684_v1 }
0x116c   :  { %v1662_v46 = vsel %vm57_vm0, %v1656_v12, 0.0 }
0x116d   :  { %1663 = vadd.xlane.f32.xlu2 %v1662_v46 }
0x116f   :  { %v1653_v6 = vpop.f32.mrf.mxu3 }
0x1170   :  { %v1654_v32 = vadd.f32 %v2140_v16, %v1653_v6 }
0x1172   :  { %v1657_v13 = vadd.f32 %v1654_v32, %v2686_v57  ;;  %v2108_v57 = vld [vmem:[%s2770_s13 + $0x8] sm:$0xff] }
0x1173   :  { %1746 = vmatpush.bf16.msrb.mxu0 %v2108_v57 }
0x1174   :  { %v1665_v33 = vsel %vm57_vm0, %v1657_v13, 0.0 }
0x1175   :  { %1666 = vadd.xlane.f32.xlu0 %v1665_v33 }
0x1177   :  { %1747 = vmatpush.bf16.msrb.mxu0 %v2107_v45 }
0x11e0   :  { %v1664_v34 = vpop.xlane.xlu2 %1663 }
0x11e1   :  { %v1668_v47 = vmul.f32 %v1664_v34, %v2324_v10 }
0x11e3   :  { %v1670_v35 = vsub.f32 %v1656_v12, %v1668_v47 }
0x11e5   :  { %v1672_v36 = vmul.f32 %v1670_v35, %v1670_v35 }
0x11e7   :  { %v1674_v37 = vsel %vm57_vm0, %v1672_v36, 0.0 }
0x11e8   :  { %v1667_v38 = vpop.xlane.xlu0 %1666  ;;  %1675 = vadd.xlane.f32.xlu1 %v1674_v37 }
0x11e9   :  { %v1669_v1 = vmul.f32 %v1667_v38, %v2324_v10 }
0x11eb   :  { %v1671_v39 = vsub.f32 %v1657_v13, %v1669_v1 }
0x11ed   :  { %v1673_v40 = vmul.f32 %v1671_v39, %v1671_v39 }
0x11ef   :  { %v1677_v41 = vsel %vm57_vm0, %v1673_v40, 0.0 }
0x11f0   :  { %1678 = vadd.xlane.f32.xlu2 %v1677_v41 }
0x125b   :  { %v1676_v42 = vpop.xlane.xlu1 %1675 }
0x125c   :  { %v1680_v43 = vmul.f32 %v1676_v42, %v2324_v10 }
0x125e   :  { %v1682_v44 = vadd.f32 1e-12, %v1680_v43 }
0x1260   :  { %2202 = vrsqrt.f32 %v1682_v44  ;;  %vm1690_vm8 = vweird.f32 %v1682_v44 }
0x1263   :  { %v1679_v48 = vpop.xlane.xlu2 %1678 }
0x1264   :  { %v1681_v49 = vmul.f32 %v1679_v48, %v2324_v10  ;;  %v2141_v10 = vld [vmem:[%s2769_s12 + $0x2] ss:$0 sm:$0xff]  ;;  %s1762_s12 = sshll.u32 %s2772_s15, 4  ;;  %s1763_s12 = int_to_ptr.hbm [resolvable:$true] %s1762_s12 }
0x1266   :  { %v2203_v50 = vpop.eup %2202  ;;  %v1683_v22 = vadd.f32 1e-12, %v1681_v49 }
0x1267   :  { %v1685_v56 = vmul.f32 %v2203_v50, %v1682_v44  ;;  %vm1691_vm13 = vweird.f32 %v2203_v50 }
0x1268   :  { %2204 = vrsqrt.f32 %v1683_v22  ;;  %vm1692_vm9 = vmor %vm1690_vm8, %vm1691_vm13  ;;  %vm1700_vm5 = vweird.f32 %v1683_v22 }
0x1269   :  { %v1686_v58 = vmul.f32 %v2203_v50, %v1685_v56 }
0x126b   :  { %v1687_v59 = vmul.f32 0.5, %v1686_v58 }
0x126d   :  { %v1688_v60 = vsub.f32 1.5, %v1687_v59 }
0x126e   :  { %v2205_v23 = vpop.eup %2204 }
0x126f   :  { %v1689_v62 = vmul.f32 %v2203_v50, %v1688_v60  ;;  %v1695_v63 = vmul.f32 %v2205_v23, %v1683_v22  ;;  %vm1701_vm10 = vweird.f32 %v2205_v23 }
0x1270   :  { %vm1702_vm6 = vmor %vm1700_vm5, %vm1701_vm10 }
0x1271   :  { %v1696_v2 = vmul.f32 %v2205_v23, %v1695_v63  ;;  %v1693_v3 = vsel %vm1692_vm9, %v2203_v50, %v1689_v62 }
0x1272   :  { %v1704_v11 = vmul.f32 %v1693_v3, %v1670_v35 }
0x1273   :  { %v1697_v4 = vmul.f32 0.5, %v1696_v2 }
0x1274   :  { %v1709_v9 = vmul.f32 %v2141_v10, %v1704_v11 }
0x1275   :  { %v1698_v8 = vsub.f32 1.5, %v1697_v4 }
0x1276   :  { %v1714_v17 = vadd.f32 %v2142_v14, %v1709_v9 }
0x1277   :  { %v1699_v5 = vmul.f32 %v2205_v23, %v1698_v8 }
0x1279   :  { %v1703_v52 = vsel %vm1702_vm6, %v2205_v23, %v1699_v5 }
0x127a   :  { %v1705_v15 = vmul.f32 %v1703_v52, %v1671_v39 }
0x127c   :  { %v1710_v54 = vmul.f32 %v2141_v10, %v1705_v15 }
0x127e   :  { %v1715_v0 = vadd.f32 %v2142_v14, %v1710_v54 }
0x1280   :  { %v1720_v18 = vpack.c.bf16 %v1715_v0, %v1714_v17 }
0x1282   :  { %2066 = vmatmul.msk.bf16.vlgmr.msrb.gmra.mxu0 %vm57_vm0, %v1720_v18 }
0x12ff   :  { %v1749_v21 = vpop.f32.mrf.mxu0 }
0x1300   :  { %v1750_v51 = vadd.f32 %v2143_v20, %v1749_v21 }
0x1302   :  { %1754 = vst [vmem:[#allocation2] sm:$0xff] %v1750_v51 }
0x1307   :  { %v1751_v19 = vpop.f32.mrf.mxu0 }
0x1308   :  { %v1752_v61 = vadd.f32 %v2143_v20, %v1751_v19 }
0x130a   :  { %1755 = vst [vmem:[#allocation2 + $0x8] sm:$0xff] %v1752_v61 }
0x130b   :  { %1768 = dma.vmem_to_hbm [thread:$0]  %s1761_s29, 256, %s1763_s12, [#allocation3], %s2234_s16, %s2234_s16, %s2235_s17  }
0x130c   :  { %2230 = dma.done.wait [#allocation3], 256  }
0x130d   :  { %2231 = vsyncadd [#allocation3], 4294967040 }
0x130e   :  { %1773 = vsyncpa [#allocation3], 1 }

</bundles_post_ra>
